<compile_context>
chip_gen: v7x
topology: tpu7x:2x2x1
jax: 0.10.0
libtpu: 0.0.40
codegen_flags: <defaults>
</compile_context>

<pallas_src>
import jax
import jax.numpy as jnp
from jax.experimental import pallas as pl
from jax.experimental.pallas import tpu as pltpu


# ------------------------------ fused Encoder kernel ------------------------------
def _encoder_kernel(x_ref, h0_ref, c0_ref, wpack_ref, bpack_ref, fcpack_ref,
                    out_ref, hn_ref, cn_ref, hs1_scr):
    B, T, D = x_ref.shape
    H = h0_ref.shape[-1]
    G = 4 * H
    N = B * T
    F = 16
    f32 = jnp.float32
    mm_dt = wpack_ref.dtype          # matmul operand dtype (f32 or bf16)

    # ---- unpack LSTM weights (static slices of the single packed block) ----
    w_ih0 = wpack_ref[0:D, :]                        # (D, 4H)
    w_hh0 = wpack_ref[D:D + H, :]                    # (H, 4H)
    w_ih1 = wpack_ref[D + H:D + 2 * H, :]            # (H, 4H)
    w_hh1 = wpack_ref[D + 2 * H:D + 3 * H, :]        # (H, 4H)
    b0 = bpack_ref[0:1, :]                           # (1, 4H)  folded b_ih+b_hh
    b1 = bpack_ref[1:2, :]                           # (1, 4H)

    def cell(gates, c):
        """gates: (B,4H) f32 pre-activations (PyTorch order i,f,g,o)."""
        sg = jax.nn.sigmoid(gates)   # one full-vreg EUP pass (i, f, o lanes)
        th = jnp.tanh(gates)         # one full-vreg EUP pass (g lanes)
        i = sg[:, 0 * H:1 * H]
        f = sg[:, 1 * H:2 * H]
        g = th[:, 2 * H:3 * H]
        o = sg[:, 3 * H:4 * H]
        c = f * c + i * g
        h = o * jnp.tanh(c)
        return h, c

    # ------------------------------ LSTM layer 0 ------------------------------
    # Hoisted input projection: one batched (N,D)x(D,4H) MXU matmul.
    x2d = x_ref[...].reshape(N, D).astype(mm_dt)
    xp0 = (jnp.dot(x2d, w_ih0, preferred_element_type=f32) + b0).reshape(B, T, G)

    h0l = h0_ref[0].astype(f32)
    c0l = c0_ref[0].astype(f32)
    h1l = h0_ref[1].astype(f32)
    c1l = c0_ref[1].astype(f32)

    # Layer-0 step 0 (primes the wavefront).
    h0l, c0l = cell(
        xp0[:, 0, :] + jnp.dot(h0l.astype(mm_dt), w_hh0, preferred_element_type=f32),
        c0l)
    h_prev = h0l                                     # layer-0 output at step 0

    # Wavefront: layer-1 step t-1 only needs layer-0's output at t-1, so it is
    # independent of layer-0 step t.  Fully unrolled -> one basic block, the
    # scheduler overlaps the two MXU->EUP chains.
    for t in range(1, T):                            # T is small & static
        g1 = (jnp.dot(h_prev.astype(mm_dt), w_ih1, preferred_element_type=f32)
              + jnp.dot(h1l.astype(mm_dt), w_hh1, preferred_element_type=f32)
              + b1)                                  # layer-1 step t-1 gates
        g0 = xp0[:, t, :] + jnp.dot(h0l.astype(mm_dt), w_hh0,
                                    preferred_element_type=f32)  # layer-0 step t
        h1l, c1l = cell(g1, c1l)
        hs1_scr[:, t - 1, :] = h1l                   # per-step store (no stack)
        h0l, c0l = cell(g0, c0l)
        h_prev = h0l

    # Final layer-1 step T-1.
    g1 = (jnp.dot(h_prev.astype(mm_dt), w_ih1, preferred_element_type=f32)
          + jnp.dot(h1l.astype(mm_dt), w_hh1, preferred_element_type=f32)
          + b1)
    h1l, c1l = cell(g1, c1l)
    hs1_scr[:, T - 1, :] = h1l

    hn_ref[0] = h0l.astype(hn_ref.dtype)
    cn_ref[0] = c0l.astype(cn_ref.dtype)
    hn_ref[1] = h1l.astype(hn_ref.dtype)
    cn_ref[1] = c1l.astype(cn_ref.dtype)

    # --------------------- FC head, untransposed (N x features) ---------------
    fc1_wT = fcpack_ref[0:H, :]                      # (H, 16)
    fc2_wT = fcpack_ref[H:H + F, :]                  # (16, 16)
    fc3_wT = fcpack_ref[H + F:H + 2 * F, 0:1]        # (16, 1)
    fc1_b = fcpack_ref[H + 2 * F + 0:H + 2 * F + 1, :]   # (1, 16)
    fc2_b = fcpack_ref[H + 2 * F + 1:H + 2 * F + 2, :]   # (1, 16)
    fc3_b = fcpack_ref[H + 2 * F + 2:H + 2 * F + 3, 0:1]  # (1, 1)

    a = hs1_scr[...].reshape(N, H)                   # rows ordered n = b*T + t
    y = jnp.maximum(jnp.dot(a, fc1_wT, preferred_element_type=f32) + fc1_b, 0.0)
    # nn.Dropout(0.3): identity in eval mode
    y = jnp.maximum(jnp.dot(y, fc2_wT, preferred_element_type=f32) + fc2_b, 0.0)
    # nn.Dropout(0.3): identity in eval mode
    y = jax.nn.sigmoid(jnp.dot(y, fc3_wT, preferred_element_type=f32) + fc3_b)  # (N,1)
    out_ref[...] = y.astype(out_ref.dtype)


# --------------------------------- Encoder wrapper ---------------------------------
def encoder_forward(x, hidden, params):
    """x: (B, T, input_size) batch_first; hidden = (h0, c0), each (L, B, H).
    Returns (outputs (B, T, 1), (h_n, c_n))."""
    h0, c0 = hidden
    B, T, D = x.shape
    L, _, H = h0.shape
    assert L == 2, "kernel is specialized for num_layers=2 (module default)"
    N = B * T
    G = 4 * H
    F = 16

    # Advisory cost estimate so XLA can schedule this few-microsecond call.
    flops = int(2 * N * D * G            # layer-0 input projection (hoisted)
                + 3 * T * 2 * B * H * G  # layer-0 recur + layer-1 inproj + recur
                + 2 * N * (H * F + F * F + F))         # FC head
    transcendentals = int(T * L * B * 9 * H + N)       # sigmoid/tanh passes + head
    bytes_accessed = int(4 * (x.size + 4 * L * B * H + N)
                         + params["lstm_w"].size * params["lstm_w"].dtype.itemsize
                         + params["lstm_b"].size * 4
                         + params["fc_pack"].size * 4)

    y, h_n, c_n = pl.pallas_call(
        _encoder_kernel,
        out_shape=(jax.ShapeDtypeStruct((N, 1), x.dtype),
                   jax.ShapeDtypeStruct((L, B, H), x.dtype),
                   jax.ShapeDtypeStruct((L, B, H), x.dtype)),
        scratch_shapes=[pltpu.VMEM((B, T, H), jnp.float32)],   # layer-1 hidden states
        cost_estimate=pl.CostEstimate(flops=flops,
                                      transcendentals=transcendentals,
                                      bytes_accessed=bytes_accessed),
    )(x, h0, c0, params["lstm_w"], params["lstm_b"], params["fc_pack"])

    # Rows of y are ordered n = b*T + t, so this reshape is exactly batch_first.
    outputs = y.reshape(B, T, 1)
    return outputs, (h_n, c_n)
    # TODO(synk): for non-toy batch sizes on v7x, add a grid over B with
    # dimension_semantics=("parallel",) to use both TensorCores and re-budget
    # the all-in-VMEM footprint against 64 MiB.


# ----------------------------------- parameter init -----------------------------------
def init_params(key, input_size, hidden_size, num_layers=2, matmul_dtype=jnp.float32):
    """matmul_dtype=jnp.bfloat16 enables the native-bf16 MXU path on v6e/v7x;
    default f32 matches PyTorch numerics exactly. State/elementwise math is f32
    inside the kernel regardless."""
    assert num_layers == 2
    H, D, F = hidden_size, input_size, 16
    k = 1.0 / jnp.sqrt(jnp.float32(H))

    # LSTM weights, stored transposed relative to PyTorch ((D,4H)/(H,4H) vs
    # (4H,D)/(4H,H)); gate order i,f,g,o; biases folded (b_ih + b_hh).
    blocks, biases = [], []
    for layer in range(num_layers):
        d_in = D if layer == 0 else H
        key, k1, k2, k3, k4 = jax.random.split(key, 5)
        w_ih = jax.random.uniform(k1, (d_in, 4 * H), jnp.float32, -k, k)
        w_hh = jax.random.uniform(k2, (H, 4 * H), jnp.float32, -k, k)
        b_ih = jax.random.uniform(k3, (4 * H,), jnp.float32, -k, k)
        b_hh = jax.random.uniform(k4, (4 * H,), jnp.float32, -k, k)
        blocks += [w_ih, w_hh]
        biases.append(b_ih + b_hh)
    lstm_w = jnp.concatenate(blocks, axis=0).astype(matmul_dtype)   # (D+3H, 4H)
    lstm_b = jnp.stack(biases, axis=0)                              # (2, 4H) f32

    # FC head: PyTorch-init weights, stored transposed and packed with biases
    # into a single (H+35, 16) block.  fc3 columns 1..15 are zero padding.
    key, k1, k2, k3, k4, k5, k6 = jax.random.split(key, 7)
    fc1_w = jax.random.uniform(k1, (F, H), jnp.float32, -k, k)
    fc1_b = jax.random.uniform(k2, (F,), jnp.float32, -k, k)
    fc2_w = jax.random.uniform(k3, (F, F), jnp.float32, -0.25, 0.25)
    fc2_b = jax.random.uniform(k4, (F,), jnp.float32, -0.25, 0.25)
    fc3_w = jax.random.uniform(k5, (1, F), jnp.float32, -0.25, 0.25)
    fc3_b = jax.random.uniform(k6, (1,), jnp.float32, -0.25, 0.25)
    fc_pack = jnp.concatenate([
        fc1_w.T,                                         # rows [0, H)
        fc2_w.T,                                         # rows [H, H+16)
        jnp.pad(fc3_w.T, ((0, 0), (0, F - 1))),          # rows [H+16, H+32), col 0
        fc1_b.reshape(1, F),                             # row H+32
        fc2_b.reshape(1, F),                             # row H+33
        jnp.pad(fc3_b.reshape(1, 1), ((0, 0), (0, F - 1))),  # row H+34, col 0
    ], axis=0)                                           # (H+35, 16) f32

    return {"lstm_w": lstm_w, "lstm_b": lstm_b, "fc_pack": fc_pack}


if __name__ == "__main__":
    # Small shapes consistent with the module's forward:
    #   x: (batch, seq, input_size); hidden: (h0, c0), each (num_layers, batch, hidden)
    B, T, INPUT_SIZE, HIDDEN, LAYERS = 2, 8, 32, 32, 2

    key = jax.random.PRNGKey(0)
    key, kx, kh, kc = jax.random.split(key, 4)
    x = jax.random.normal(kx, (B, T, INPUT_SIZE), jnp.float32)
    h0 = jax.random.normal(kh, (LAYERS, B, HIDDEN), jnp.float32)
    c0 = jax.random.normal(kc, (LAYERS, B, HIDDEN), jnp.float32)

    params = init_params(key, INPUT_SIZE, HIDDEN, LAYERS)

    outputs, (h_n, c_n) = encoder_forward(x, (h0, c0), params)
    jax.block_until_ready((outputs, h_n, c_n))

    assert outputs.shape == (B, T, 1)
    assert h_n.shape == (LAYERS, B, HIDDEN) and c_n.shape == (LAYERS, B, HIDDEN)
    assert bool(jnp.all(jnp.isfinite(outputs)))
    assert bool(jnp.all(outputs >= 0.0)) and bool(jnp.all(outputs <= 1.0))
    print("KERNEL_OK")
</pallas_src>

<mosaic_0001>
module attributes {stable_mosaic.version = 11 : i64} {
  func.func @_encoder_kernel(%arg0: memref<2x8x32xf32, #tpu.memory_space<vmem>>, %arg1: memref<2x2x32xf32, #tpu.memory_space<vmem>>, %arg2: memref<2x2x32xf32, #tpu.memory_space<vmem>>, %arg3: memref<128x128xf32, #tpu.memory_space<vmem>>, %arg4: memref<2x128xf32, #tpu.memory_space<vmem>>, %arg5: memref<67x16xf32, #tpu.memory_space<vmem>>, %arg6: memref<16x1xf32, #tpu.memory_space<vmem>>, %arg7: memref<2x2x32xf32, #tpu.memory_space<vmem>>, %arg8: memref<2x2x32xf32, #tpu.memory_space<vmem>>, %arg9: memref<2x8x32xf32, #tpu.memory_space<vmem>>) attributes {dimension_semantics = [], scalar_prefetch = 0 : i64, scratch_operands = 1 : i64, tpu.core_type = #tpu.core_type<tc>} {
    %c0 = arith.constant 0 : index
    %c0_0 = arith.constant 0 : index
    %0 = vector.load %arg3[%c0, %c0_0] : memref<128x128xf32, #tpu.memory_space<vmem>>, vector<32x128xf32>
    %c32 = arith.constant 32 : index
    %c0_1 = arith.constant 0 : index
    %1 = vector.load %arg3[%c32, %c0_1] : memref<128x128xf32, #tpu.memory_space<vmem>>, vector<32x128xf32>
    %c64 = arith.constant 64 : index
    %c0_2 = arith.constant 0 : index
    %2 = vector.load %arg3[%c64, %c0_2] : memref<128x128xf32, #tpu.memory_space<vmem>>, vector<32x128xf32>
    %c96 = arith.constant 96 : index
    %c0_3 = arith.constant 0 : index
    %3 = vector.load %arg3[%c96, %c0_3] : memref<128x128xf32, #tpu.memory_space<vmem>>, vector<32x128xf32>
    %c0_4 = arith.constant 0 : index
    %c0_5 = arith.constant 0 : index
    %4 = vector.load %arg4[%c0_4, %c0_5] : memref<2x128xf32, #tpu.memory_space<vmem>>, vector<1x128xf32>
    %c1 = arith.constant 1 : index
    %c0_6 = arith.constant 0 : index
    %5 = vector.load %arg4[%c1, %c0_6] : memref<2x128xf32, #tpu.memory_space<vmem>>, vector<1x128xf32>
    %c0_7 = arith.constant 0 : index
    %c0_8 = arith.constant 0 : index
    %c0_9 = arith.constant 0 : index
    %6 = vector.load %arg0[%c0_7, %c0_8, %c0_9] : memref<2x8x32xf32, #tpu.memory_space<vmem>>, vector<2x8x32xf32>
    %7 = vector.shape_cast %6 : vector<2x8x32xf32> to vector<16x32xf32>
    %cst = arith.constant dense<0.000000e+00> : vector<16x128xf32>
    %8 = tpu.matmul %7, %0, %cst {dimension_numbers = #tpu.dot_dimension_numbers<[1], [0], [0], [1], [0, 0, 1, 1], [], []>} : vector<16x32xf32>, vector<32x128xf32>, vector<16x128xf32> -> vector<16x128xf32>
    %9 = vector.broadcast %4 : vector<1x128xf32> to vector<16x128xf32>
    %10 = arith.addf %8, %9 : vector<16x128xf32>
    %11 = vector.shape_cast %10 : vector<16x128xf32> to vector<2x8x128xf32>
    %c0_10 = arith.constant 0 : index
    %c0_11 = arith.constant 0 : index
    %c0_12 = arith.constant 0 : index
    %12 = vector.load %arg1[%c0_10, %c0_11, %c0_12] : memref<2x2x32xf32, #tpu.memory_space<vmem>>, vector<1x2x32xf32>
    %13 = vector.shape_cast %12 : vector<1x2x32xf32> to vector<2x32xf32>
    %c0_13 = arith.constant 0 : index
    %c0_14 = arith.constant 0 : index
    %c0_15 = arith.constant 0 : index
    %14 = vector.load %arg2[%c0_13, %c0_14, %c0_15] : memref<2x2x32xf32, #tpu.memory_space<vmem>>, vector<1x2x32xf32>
    %15 = vector.shape_cast %14 : vector<1x2x32xf32> to vector<2x32xf32>
    %c1_16 = arith.constant 1 : index
    %c0_17 = arith.constant 0 : index
    %c0_18 = arith.constant 0 : index
    %16 = vector.load %arg1[%c1_16, %c0_17, %c0_18] : memref<2x2x32xf32, #tpu.memory_space<vmem>>, vector<1x2x32xf32>
    %17 = vector.shape_cast %16 : vector<1x2x32xf32> to vector<2x32xf32>
    %c1_19 = arith.constant 1 : index
    %c0_20 = arith.constant 0 : index
    %c0_21 = arith.constant 0 : index
    %18 = vector.load %arg2[%c1_19, %c0_20, %c0_21] : memref<2x2x32xf32, #tpu.memory_space<vmem>>, vector<1x2x32xf32>
    %19 = vector.shape_cast %18 : vector<1x2x32xf32> to vector<2x32xf32>
    %20 = vector.extract_strided_slice %11 {offsets = [0, 0, 0], sizes = [2, 1, 128], strides = [1, 1, 1]} : vector<2x8x128xf32> to vector<2x1x128xf32>
    %21 = vector.shape_cast %20 : vector<2x1x128xf32> to vector<2x128xf32>
    %cst_22 = arith.constant dense<0.000000e+00> : vector<2x128xf32>
    %22 = tpu.matmul %13, %1, %cst_22 {dimension_numbers = #tpu.dot_dimension_numbers<[1], [0], [0], [1], [0, 0, 1, 1], [], []>} : vector<2x32xf32>, vector<32x128xf32>, vector<2x128xf32> -> vector<2x128xf32>
    %23 = arith.addf %21, %22 : vector<2x128xf32>
    %24 = arith.negf %23 : vector<2x128xf32>
    %25 = math.exp %24 : vector<2x128xf32>
    %cst_23 = arith.constant 1.000000e+00 : f32
    %26 = vector.broadcast %cst_23 : f32 to vector<2x128xf32>
    %27 = arith.addf %26, %25 : vector<2x128xf32>
    %28 = arith.divf %26, %27 : vector<2x128xf32>
    %29 = math.tanh %23 : vector<2x128xf32>
    %30 = vector.extract_strided_slice %28 {offsets = [0, 0], sizes = [2, 32], strides = [1, 1]} : vector<2x128xf32> to vector<2x32xf32>
    %31 = vector.extract_strided_slice %28 {offsets = [0, 32], sizes = [2, 32], strides = [1, 1]} : vector<2x128xf32> to vector<2x32xf32>
    %32 = vector.extract_strided_slice %29 {offsets = [0, 64], sizes = [2, 32], strides = [1, 1]} : vector<2x128xf32> to vector<2x32xf32>
    %33 = vector.extract_strided_slice %28 {offsets = [0, 96], sizes = [2, 32], strides = [1, 1]} : vector<2x128xf32> to vector<2x32xf32>
    %34 = arith.mulf %31, %15 : vector<2x32xf32>
    %35 = arith.mulf %30, %32 : vector<2x32xf32>
    %36 = arith.addf %34, %35 : vector<2x32xf32>
    %37 = math.tanh %36 : vector<2x32xf32>
    %38 = arith.mulf %33, %37 : vector<2x32xf32>
    %cst_24 = arith.constant dense<0.000000e+00> : vector<2x128xf32>
    %39 = tpu.matmul %38, %2, %cst_24 {dimension_numbers = #tpu.dot_dimension_numbers<[1], [0], [0], [1], [0, 0, 1, 1], [], []>} : vector<2x32xf32>, vector<32x128xf32>, vector<2x128xf32> -> vector<2x128xf32>
    %cst_25 = arith.constant dense<0.000000e+00> : vector<2x128xf32>
    %40 = tpu.matmul %17, %3, %cst_25 {dimension_numbers = #tpu.dot_dimension_numbers<[1], [0], [0], [1], [0, 0, 1, 1], [], []>} : vector<2x32xf32>, vector<32x128xf32>, vector<2x128xf32> -> vector<2x128xf32>
    %41 = arith.addf %39, %40 : vector<2x128xf32>
    %42 = vector.broadcast %5 : vector<1x128xf32> to vector<2x128xf32>
    %43 = arith.addf %41, %42 : vector<2x128xf32>
    %44 = vector.extract_strided_slice %11 {offsets = [0, 1, 0], sizes = [2, 1, 128], strides = [1, 1, 1]} : vector<2x8x128xf32> to vector<2x1x128xf32>
    %45 = vector.shape_cast %44 : vector<2x1x128xf32> to vector<2x128xf32>
    %cst_26 = arith.constant dense<0.000000e+00> : vector<2x128xf32>
    %46 = tpu.matmul %38, %1, %cst_26 {dimension_numbers = #tpu.dot_dimension_numbers<[1], [0], [0], [1], [0, 0, 1, 1], [], []>} : vector<2x32xf32>, vector<32x128xf32>, vector<2x128xf32> -> vector<2x128xf32>
    %47 = arith.addf %45, %46 : vector<2x128xf32>
    %48 = arith.negf %43 : vector<2x128xf32>
    %49 = math.exp %48 : vector<2x128xf32>
    %cst_27 = arith.constant 1.000000e+00 : f32
    %50 = vector.broadcast %cst_27 : f32 to vector<2x128xf32>
    %51 = arith.addf %50, %49 : vector<2x128xf32>
    %52 = arith.divf %50, %51 : vector<2x128xf32>
    %53 = math.tanh %43 : vector<2x128xf32>
    %54 = vector.extract_strided_slice %52 {offsets = [0, 0], sizes = [2, 32], strides = [1, 1]} : vector<2x128xf32> to vector<2x32xf32>
    %55 = vector.extract_strided_slice %52 {offsets = [0, 32], sizes = [2, 32], strides = [1, 1]} : vector<2x128xf32> to vector<2x32xf32>
    %56 = vector.extract_strided_slice %53 {offsets = [0, 64], sizes = [2, 32], strides = [1, 1]} : vector<2x128xf32> to vector<2x32xf32>
    %57 = vector.extract_strided_slice %52 {offsets = [0, 96], sizes = [2, 32], strides = [1, 1]} : vector<2x128xf32> to vector<2x32xf32>
    %58 = arith.mulf %55, %19 : vector<2x32xf32>
    %59 = arith.mulf %54, %56 : vector<2x32xf32>
    %60 = arith.addf %58, %59 : vector<2x32xf32>
    %61 = math.tanh %60 : vector<2x32xf32>
    %62 = arith.mulf %57, %61 : vector<2x32xf32>
    %c0_28 = arith.constant 0 : index
    %c0_29 = arith.constant 0 : index
    %c0_30 = arith.constant 0 : index
    %63 = vector.load %arg9[%c0_28, %c0_29, %c0_30] : memref<2x8x32xf32, #tpu.memory_space<vmem>>, vector<2x1x32xf32>
    %64 = vector.shape_cast %63 : vector<2x1x32xf32> to vector<2x32xf32>
    %65 = vector.shape_cast %62 : vector<2x32xf32> to vector<2x1x32xf32>
    tpu.vector_store %arg9[%c0_28, %c0_29, %c0_30], %65 {strides = array<i32>} : memref<2x8x32xf32, #tpu.memory_space<vmem>>, vector<2x1x32xf32>,
    %66 = arith.negf %47 : vector<2x128xf32>
    %67 = math.exp %66 : vector<2x128xf32>
    %cst_31 = arith.constant 1.000000e+00 : f32
    %68 = vector.broadcast %cst_31 : f32 to vector<2x128xf32>
    %69 = arith.addf %68, %67 : vector<2x128xf32>
    %70 = arith.divf %68, %69 : vector<2x128xf32>
    %71 = math.tanh %47 : vector<2x128xf32>
    %72 = vector.extract_strided_slice %70 {offsets = [0, 0], sizes = [2, 32], strides = [1, 1]} : vector<2x128xf32> to vector<2x32xf32>
    %73 = vector.extract_strided_slice %70 {offsets = [0, 32], sizes = [2, 32], strides = [1, 1]} : vector<2x128xf32> to vector<2x32xf32>
    %74 = vector.extract_strided_slice %71 {offsets = [0, 64], sizes = [2, 32], strides = [1, 1]} : vector<2x128xf32> to vector<2x32xf32>
    %75 = vector.extract_strided_slice %70 {offsets = [0, 96], sizes = [2, 32], strides = [1, 1]} : vector<2x128xf32> to vector<2x32xf32>
    %76 = arith.mulf %73, %36 : vector<2x32xf32>
    %77 = arith.mulf %72, %74 : vector<2x32xf32>
    %78 = arith.addf %76, %77 : vector<2x32xf32>
    %79 = math.tanh %78 : vector<2x32xf32>
    %80 = arith.mulf %75, %79 : vector<2x32xf32>
    %cst_32 = arith.constant dense<0.000000e+00> : vector<2x128xf32>
    %81 = tpu.matmul %80, %2, %cst_32 {dimension_numbers = #tpu.dot_dimension_numbers<[1], [0], [0], [1], [0, 0, 1, 1], [], []>} : vector<2x32xf32>, vector<32x128xf32>, vector<2x128xf32> -> vector<2x128xf32>
    %cst_33 = arith.constant dense<0.000000e+00> : vector<2x128xf32>
    %82 = tpu.matmul %62, %3, %cst_33 {dimension_numbers = #tpu.dot_dimension_numbers<[1], [0], [0], [1], [0, 0, 1, 1], [], []>} : vector<2x32xf32>, vector<32x128xf32>, vector<2x128xf32> -> vector<2x128xf32>
    %83 = arith.addf %81, %82 : vector<2x128xf32>
    %84 = vector.broadcast %5 : vector<1x128xf32> to vector<2x128xf32>
    %85 = arith.addf %83, %84 : vector<2x128xf32>
    %86 = vector.extract_strided_slice %11 {offsets = [0, 2, 0], sizes = [2, 1, 128], strides = [1, 1, 1]} : vector<2x8x128xf32> to vector<2x1x128xf32>
    %87 = vector.shape_cast %86 : vector<2x1x128xf32> to vector<2x128xf32>
    %cst_34 = arith.constant dense<0.000000e+00> : vector<2x128xf32>
    %88 = tpu.matmul %80, %1, %cst_34 {dimension_numbers = #tpu.dot_dimension_numbers<[1], [0], [0], [1], [0, 0, 1, 1], [], []>} : vector<2x32xf32>, vector<32x128xf32>, vector<2x128xf32> -> vector<2x128xf32>
    %89 = arith.addf %87, %88 : vector<2x128xf32>
    %90 = arith.negf %85 : vector<2x128xf32>
    %91 = math.exp %90 : vector<2x128xf32>
    %cst_35 = arith.constant 1.000000e+00 : f32
    %92 = vector.broadcast %cst_35 : f32 to vector<2x128xf32>
    %93 = arith.addf %92, %91 : vector<2x128xf32>
    %94 = arith.divf %92, %93 : vector<2x128xf32>
    %95 = math.tanh %85 : vector<2x128xf32>
    %96 = vector.extract_strided_slice %94 {offsets = [0, 0], sizes = [2, 32], strides = [1, 1]} : vector<2x128xf32> to vector<2x32xf32>
    %97 = vector.extract_strided_slice %94 {offsets = [0, 32], sizes = [2, 32], strides = [1, 1]} : vector<2x128xf32> to vector<2x32xf32>
    %98 = vector.extract_strided_slice %95 {offsets = [0, 64], sizes = [2, 32], strides = [1, 1]} : vector<2x128xf32> to vector<2x32xf32>
    %99 = vector.extract_strided_slice %94 {offsets = [0, 96], sizes = [2, 32], strides = [1, 1]} : vector<2x128xf32> to vector<2x32xf32>
    %100 = arith.mulf %97, %60 : vector<2x32xf32>
    %101 = arith.mulf %96, %98 : vector<2x32xf32>
    %102 = arith.addf %100, %101 : vector<2x32xf32>
    %103 = math.tanh %102 : vector<2x32xf32>
    %104 = arith.mulf %99, %103 : vector<2x32xf32>
    %c0_36 = arith.constant 0 : index
    %c1_37 = arith.constant 1 : index
    %c0_38 = arith.constant 0 : index
    %105 = vector.load %arg9[%c0_36, %c1_37, %c0_38] : memref<2x8x32xf32, #tpu.memory_space<vmem>>, vector<2x1x32xf32>
    %106 = vector.shape_cast %105 : vector<2x1x32xf32> to vector<2x32xf32>
    %107 = vector.shape_cast %104 : vector<2x32xf32> to vector<2x1x32xf32>
    tpu.vector_store %arg9[%c0_36, %c1_37, %c0_38], %107 {strides = array<i32>} : memref<2x8x32xf32, #tpu.memory_space<vmem>>, vector<2x1x32xf32>,
    %108 = arith.negf %89 : vector<2x128xf32>
    %109 = math.exp %108 : vector<2x128xf32>
    %cst_39 = arith.constant 1.000000e+00 : f32
    %110 = vector.broadcast %cst_39 : f32 to vector<2x128xf32>
    %111 = arith.addf %110, %109 : vector<2x128xf32>
    %112 = arith.divf %110, %111 : vector<2x128xf32>
    %113 = math.tanh %89 : vector<2x128xf32>
    %114 = vector.extract_strided_slice %112 {offsets = [0, 0], sizes = [2, 32], strides = [1, 1]} : vector<2x128xf32> to vector<2x32xf32>
    %115 = vector.extract_strided_slice %112 {offsets = [0, 32], sizes = [2, 32], strides = [1, 1]} : vector<2x128xf32> to vector<2x32xf32>
    %116 = vector.extract_strided_slice %113 {offsets = [0, 64], sizes = [2, 32], strides = [1, 1]} : vector<2x128xf32> to vector<2x32xf32>
    %117 = vector.extract_strided_slice %112 {offsets = [0, 96], sizes = [2, 32], strides = [1, 1]} : vector<2x128xf32> to vector<2x32xf32>
    %118 = arith.mulf %115, %78 : vector<2x32xf32>
    %119 = arith.mulf %114, %116 : vector<2x32xf32>
    %120 = arith.addf %118, %119 : vector<2x32xf32>
    %121 = math.tanh %120 : vector<2x32xf32>
    %122 = arith.mulf %117, %121 : vector<2x32xf32>
    %cst_40 = arith.constant dense<0.000000e+00> : vector<2x128xf32>
    %123 = tpu.matmul %122, %2, %cst_40 {dimension_numbers = #tpu.dot_dimension_numbers<[1], [0], [0], [1], [0, 0, 1, 1], [], []>} : vector<2x32xf32>, vector<32x128xf32>, vector<2x128xf32> -> vector<2x128xf32>
    %cst_41 = arith.constant dense<0.000000e+00> : vector<2x128xf32>
    %124 = tpu.matmul %104, %3, %cst_41 {dimension_numbers = #tpu.dot_dimension_numbers<[1], [0], [0], [1], [0, 0, 1, 1], [], []>} : vector<2x32xf32>, vector<32x128xf32>, vector<2x128xf32> -> vector<2x128xf32>
    %125 = arith.addf %123, %124 : vector<2x128xf32>
    %126 = vector.broadcast %5 : vector<1x128xf32> to vector<2x128xf32>
    %127 = arith.addf %125, %126 : vector<2x128xf32>
    %128 = vector.extract_strided_slice %11 {offsets = [0, 3, 0], sizes = [2, 1, 128], strides = [1, 1, 1]} : vector<2x8x128xf32> to vector<2x1x128xf32>
    %129 = vector.shape_cast %128 : vector<2x1x128xf32> to vector<2x128xf32>
    %cst_42 = arith.constant dense<0.000000e+00> : vector<2x128xf32>
    %130 = tpu.matmul %122, %1, %cst_42 {dimension_numbers = #tpu.dot_dimension_numbers<[1], [0], [0], [1], [0, 0, 1, 1], [], []>} : vector<2x32xf32>, vector<32x128xf32>, vector<2x128xf32> -> vector<2x128xf32>
    %131 = arith.addf %129, %130 : vector<2x128xf32>
    %132 = arith.negf %127 : vector<2x128xf32>
    %133 = math.exp %132 : vector<2x128xf32>
    %cst_43 = arith.constant 1.000000e+00 : f32
    %134 = vector.broadcast %cst_43 : f32 to vector<2x128xf32>
    %135 = arith.addf %134, %133 : vector<2x128xf32>
    %136 = arith.divf %134, %135 : vector<2x128xf32>
    %137 = math.tanh %127 : vector<2x128xf32>
    %138 = vector.extract_strided_slice %136 {offsets = [0, 0], sizes = [2, 32], strides = [1, 1]} : vector<2x128xf32> to vector<2x32xf32>
    %139 = vector.extract_strided_slice %136 {offsets = [0, 32], sizes = [2, 32], strides = [1, 1]} : vector<2x128xf32> to vector<2x32xf32>
    %140 = vector.extract_strided_slice %137 {offsets = [0, 64], sizes = [2, 32], strides = [1, 1]} : vector<2x128xf32> to vector<2x32xf32>
    %141 = vector.extract_strided_slice %136 {offsets = [0, 96], sizes = [2, 32], strides = [1, 1]} : vector<2x128xf32> to vector<2x32xf32>
    %142 = arith.mulf %139, %102 : vector<2x32xf32>
    %143 = arith.mulf %138, %140 : vector<2x32xf32>
    %144 = arith.addf %142, %143 : vector<2x32xf32>
    %145 = math.tanh %144 : vector<2x32xf32>
    %146 = arith.mulf %141, %145 : vector<2x32xf32>
    %c0_44 = arith.constant 0 : index
    %c2 = arith.constant 2 : index
    %c0_45 = arith.constant 0 : index
    %147 = vector.load %arg9[%c0_44, %c2, %c0_45] : memref<2x8x32xf32, #tpu.memory_space<vmem>>, vector<2x1x32xf32>
    %148 = vector.shape_cast %147 : vector<2x1x32xf32> to vector<2x32xf32>
    %149 = vector.shape_cast %146 : vector<2x32xf32> to vector<2x1x32xf32>
    tpu.vector_store %arg9[%c0_44, %c2, %c0_45], %149 {strides = array<i32>} : memref<2x8x32xf32, #tpu.memory_space<vmem>>, vector<2x1x32xf32>,
    %150 = arith.negf %131 : vector<2x128xf32>
    %151 = math.exp %150 : vector<2x128xf32>
    %cst_46 = arith.constant 1.000000e+00 : f32
    %152 = vector.broadcast %cst_46 : f32 to vector<2x128xf32>
    %153 = arith.addf %152, %151 : vector<2x128xf32>
    %154 = arith.divf %152, %153 : vector<2x128xf32>
    %155 = math.tanh %131 : vector<2x128xf32>
    %156 = vector.extract_strided_slice %154 {offsets = [0, 0], sizes = [2, 32], strides = [1, 1]} : vector<2x128xf32> to vector<2x32xf32>
    %157 = vector.extract_strided_slice %154 {offsets = [0, 32], sizes = [2, 32], strides = [1, 1]} : vector<2x128xf32> to vector<2x32xf32>
    %158 = vector.extract_strided_slice %155 {offsets = [0, 64], sizes = [2, 32], strides = [1, 1]} : vector<2x128xf32> to vector<2x32xf32>
    %159 = vector.extract_strided_slice %154 {offsets = [0, 96], sizes = [2, 32], strides = [1, 1]} : vector<2x128xf32> to vector<2x32xf32>
    %160 = arith.mulf %157, %120 : vector<2x32xf32>
    %161 = arith.mulf %156, %158 : vector<2x32xf32>
    %162 = arith.addf %160, %161 : vector<2x32xf32>
    %163 = math.tanh %162 : vector<2x32xf32>
    %164 = arith.mulf %159, %163 : vector<2x32xf32>
    %cst_47 = arith.constant dense<0.000000e+00> : vector<2x128xf32>
    %165 = tpu.matmul %164, %2, %cst_47 {dimension_numbers = #tpu.dot_dimension_numbers<[1], [0], [0], [1], [0, 0, 1, 1], [], []>} : vector<2x32xf32>, vector<32x128xf32>, vector<2x128xf32> -> vector<2x128xf32>
    %cst_48 = arith.constant dense<0.000000e+00> : vector<2x128xf32>
    %166 = tpu.matmul %146, %3, %cst_48 {dimension_numbers = #tpu.dot_dimension_numbers<[1], [0], [0], [1], [0, 0, 1, 1], [], []>} : vector<2x32xf32>, vector<32x128xf32>, vector<2x128xf32> -> vector<2x128xf32>
    %167 = arith.addf %165, %166 : vector<2x128xf32>
    %168 = vector.broadcast %5 : vector<1x128xf32> to vector<2x128xf32>
    %169 = arith.addf %167, %168 : vector<2x128xf32>
    %170 = vector.extract_strided_slice %11 {offsets = [0, 4, 0], sizes = [2, 1, 128], strides = [1, 1, 1]} : vector<2x8x128xf32> to vector<2x1x128xf32>
    %171 = vector.shape_cast %170 : vector<2x1x128xf32> to vector<2x128xf32>
    %cst_49 = arith.constant dense<0.000000e+00> : vector<2x128xf32>
    %172 = tpu.matmul %164, %1, %cst_49 {dimension_numbers = #tpu.dot_dimension_numbers<[1], [0], [0], [1], [0, 0, 1, 1], [], []>} : vector<2x32xf32>, vector<32x128xf32>, vector<2x128xf32> -> vector<2x128xf32>
    %173 = arith.addf %171, %172 : vector<2x128xf32>
    %174 = arith.negf %169 : vector<2x128xf32>
    %175 = math.exp %174 : vector<2x128xf32>
    %cst_50 = arith.constant 1.000000e+00 : f32
    %176 = vector.broadcast %cst_50 : f32 to vector<2x128xf32>
    %177 = arith.addf %176, %175 : vector<2x128xf32>
    %178 = arith.divf %176, %177 : vector<2x128xf32>
    %179 = math.tanh %169 : vector<2x128xf32>
    %180 = vector.extract_strided_slice %178 {offsets = [0, 0], sizes = [2, 32], strides = [1, 1]} : vector<2x128xf32> to vector<2x32xf32>
    %181 = vector.extract_strided_slice %178 {offsets = [0, 32], sizes = [2, 32], strides = [1, 1]} : vector<2x128xf32> to vector<2x32xf32>
    %182 = vector.extract_strided_slice %179 {offsets = [0, 64], sizes = [2, 32], strides = [1, 1]} : vector<2x128xf32> to vector<2x32xf32>
    %183 = vector.extract_strided_slice %178 {offsets = [0, 96], sizes = [2, 32], strides = [1, 1]} : vector<2x128xf32> to vector<2x32xf32>
    %184 = arith.mulf %181, %144 : vector<2x32xf32>
    %185 = arith.mulf %180, %182 : vector<2x32xf32>
    %186 = arith.addf %184, %185 : vector<2x32xf32>
    %187 = math.tanh %186 : vector<2x32xf32>
    %188 = arith.mulf %183, %187 : vector<2x32xf32>
    %c0_51 = arith.constant 0 : index
    %c3 = arith.constant 3 : index
    %c0_52 = arith.constant 0 : index
    %189 = vector.load %arg9[%c0_51, %c3, %c0_52] : memref<2x8x32xf32, #tpu.memory_space<vmem>>, vector<2x1x32xf32>
    %190 = vector.shape_cast %189 : vector<2x1x32xf32> to vector<2x32xf32>
    %191 = vector.shape_cast %188 : vector<2x32xf32> to vector<2x1x32xf32>
    tpu.vector_store %arg9[%c0_51, %c3, %c0_52], %191 {strides = array<i32>} : memref<2x8x32xf32, #tpu.memory_space<vmem>>, vector<2x1x32xf32>,
    %192 = arith.negf %173 : vector<2x128xf32>
    %193 = math.exp %192 : vector<2x128xf32>
    %cst_53 = arith.constant 1.000000e+00 : f32
    %194 = vector.broadcast %cst_53 : f32 to vector<2x128xf32>
    %195 = arith.addf %194, %193 : vector<2x128xf32>
    %196 = arith.divf %194, %195 : vector<2x128xf32>
    %197 = math.tanh %173 : vector<2x128xf32>
    %198 = vector.extract_strided_slice %196 {offsets = [0, 0], sizes = [2, 32], strides = [1, 1]} : vector<2x128xf32> to vector<2x32xf32>
    %199 = vector.extract_strided_slice %196 {offsets = [0, 32], sizes = [2, 32], strides = [1, 1]} : vector<2x128xf32> to vector<2x32xf32>
    %200 = vector.extract_strided_slice %197 {offsets = [0, 64], sizes = [2, 32], strides = [1, 1]} : vector<2x128xf32> to vector<2x32xf32>
    %201 = vector.extract_strided_slice %196 {offsets = [0, 96], sizes = [2, 32], strides = [1, 1]} : vector<2x128xf32> to vector<2x32xf32>
    %202 = arith.mulf %199, %162 : vector<2x32xf32>
    %203 = arith.mulf %198, %200 : vector<2x32xf32>
    %204 = arith.addf %202, %203 : vector<2x32xf32>
    %205 = math.tanh %204 : vector<2x32xf32>
    %206 = arith.mulf %201, %205 : vector<2x32xf32>
    %cst_54 = arith.constant dense<0.000000e+00> : vector<2x128xf32>
    %207 = tpu.matmul %206, %2, %cst_54 {dimension_numbers = #tpu.dot_dimension_numbers<[1], [0], [0], [1], [0, 0, 1, 1], [], []>} : vector<2x32xf32>, vector<32x128xf32>, vector<2x128xf32> -> vector<2x128xf32>
    %cst_55 = arith.constant dense<0.000000e+00> : vector<2x128xf32>
    %208 = tpu.matmul %188, %3, %cst_55 {dimension_numbers = #tpu.dot_dimension_numbers<[1], [0], [0], [1], [0, 0, 1, 1], [], []>} : vector<2x32xf32>, vector<32x128xf32>, vector<2x128xf32> -> vector<2x128xf32>
    %209 = arith.addf %207, %208 : vector<2x128xf32>
    %210 = vector.broadcast %5 : vector<1x128xf32> to vector<2x128xf32>
    %211 = arith.addf %209, %210 : vector<2x128xf32>
    %212 = vector.extract_strided_slice %11 {offsets = [0, 5, 0], sizes = [2, 1, 128], strides = [1, 1, 1]} : vector<2x8x128xf32> to vector<2x1x128xf32>
    %213 = vector.shape_cast %212 : vector<2x1x128xf32> to vector<2x128xf32>
    %cst_56 = arith.constant dense<0.000000e+00> : vector<2x128xf32>
    %214 = tpu.matmul %206, %1, %cst_56 {dimension_numbers = #tpu.dot_dimension_numbers<[1], [0], [0], [1], [0, 0, 1, 1], [], []>} : vector<2x32xf32>, vector<32x128xf32>, vector<2x128xf32> -> vector<2x128xf32>
    %215 = arith.addf %213, %214 : vector<2x128xf32>
    %216 = arith.negf %211 : vector<2x128xf32>
    %217 = math.exp %216 : vector<2x128xf32>
    %cst_57 = arith.constant 1.000000e+00 : f32
    %218 = vector.broadcast %cst_57 : f32 to vector<2x128xf32>
    %219 = arith.addf %218, %217 : vector<2x128xf32>
    %220 = arith.divf %218, %219 : vector<2x128xf32>
    %221 = math.tanh %211 : vector<2x128xf32>
    %222 = vector.extract_strided_slice %220 {offsets = [0, 0], sizes = [2, 32], strides = [1, 1]} : vector<2x128xf32> to vector<2x32xf32>
    %223 = vector.extract_strided_slice %220 {offsets = [0, 32], sizes = [2, 32], strides = [1, 1]} : vector<2x128xf32> to vector<2x32xf32>
    %224 = vector.extract_strided_slice %221 {offsets = [0, 64], sizes = [2, 32], strides = [1, 1]} : vector<2x128xf32> to vector<2x32xf32>
    %225 = vector.extract_strided_slice %220 {offsets = [0, 96], sizes = [2, 32], strides = [1, 1]} : vector<2x128xf32> to vector<2x32xf32>
    %226 = arith.mulf %223, %186 : vector<2x32xf32>
    %227 = arith.mulf %222, %224 : vector<2x32xf32>
    %228 = arith.addf %226, %227 : vector<2x32xf32>
    %229 = math.tanh %228 : vector<2x32xf32>
    %230 = arith.mulf %225, %229 : vector<2x32xf32>
    %c0_58 = arith.constant 0 : index
    %c4 = arith.constant 4 : index
    %c0_59 = arith.constant 0 : index
    %231 = vector.load %arg9[%c0_58, %c4, %c0_59] : memref<2x8x32xf32, #tpu.memory_space<vmem>>, vector<2x1x32xf32>
    %232 = vector.shape_cast %231 : vector<2x1x32xf32> to vector<2x32xf32>
    %233 = vector.shape_cast %230 : vector<2x32xf32> to vector<2x1x32xf32>
    tpu.vector_store %arg9[%c0_58, %c4, %c0_59], %233 {strides = array<i32>} : memref<2x8x32xf32, #tpu.memory_space<vmem>>, vector<2x1x32xf32>,
    %234 = arith.negf %215 : vector<2x128xf32>
    %235 = math.exp %234 : vector<2x128xf32>
    %cst_60 = arith.constant 1.000000e+00 : f32
    %236 = vector.broadcast %cst_60 : f32 to vector<2x128xf32>
    %237 = arith.addf %236, %235 : vector<2x128xf32>
    %238 = arith.divf %236, %237 : vector<2x128xf32>
    %239 = math.tanh %215 : vector<2x128xf32>
    %240 = vector.extract_strided_slice %238 {offsets = [0, 0], sizes = [2, 32], strides = [1, 1]} : vector<2x128xf32> to vector<2x32xf32>
    %241 = vector.extract_strided_slice %238 {offsets = [0, 32], sizes = [2, 32], strides = [1, 1]} : vector<2x128xf32> to vector<2x32xf32>
    %242 = vector.extract_strided_slice %239 {offsets = [0, 64], sizes = [2, 32], strides = [1, 1]} : vector<2x128xf32> to vector<2x32xf32>
    %243 = vector.extract_strided_slice %238 {offsets = [0, 96], sizes = [2, 32], strides = [1, 1]} : vector<2x128xf32> to vector<2x32xf32>
    %244 = arith.mulf %241, %204 : vector<2x32xf32>
    %245 = arith.mulf %240, %242 : vector<2x32xf32>
    %246 = arith.addf %244, %245 : vector<2x32xf32>
    %247 = math.tanh %246 : vector<2x32xf32>
    %248 = arith.mulf %243, %247 : vector<2x32xf32>
    %cst_61 = arith.constant dense<0.000000e+00> : vector<2x128xf32>
    %249 = tpu.matmul %248, %2, %cst_61 {dimension_numbers = #tpu.dot_dimension_numbers<[1], [0], [0], [1], [0, 0, 1, 1], [], []>} : vector<2x32xf32>, vector<32x128xf32>, vector<2x128xf32> -> vector<2x128xf32>
    %cst_62 = arith.constant dense<0.000000e+00> : vector<2x128xf32>
    %250 = tpu.matmul %230, %3, %cst_62 {dimension_numbers = #tpu.dot_dimension_numbers<[1], [0], [0], [1], [0, 0, 1, 1], [], []>} : vector<2x32xf32>, vector<32x128xf32>, vector<2x128xf32> -> vector<2x128xf32>
    %251 = arith.addf %249, %250 : vector<2x128xf32>
    %252 = vector.broadcast %5 : vector<1x128xf32> to vector<2x128xf32>
    %253 = arith.addf %251, %252 : vector<2x128xf32>
    %254 = vector.extract_strided_slice %11 {offsets = [0, 6, 0], sizes = [2, 1, 128], strides = [1, 1, 1]} : vector<2x8x128xf32> to vector<2x1x128xf32>
    %255 = vector.shape_cast %254 : vector<2x1x128xf32> to vector<2x128xf32>
    %cst_63 = arith.constant dense<0.000000e+00> : vector<2x128xf32>
    %256 = tpu.matmul %248, %1, %cst_63 {dimension_numbers = #tpu.dot_dimension_numbers<[1], [0], [0], [1], [0, 0, 1, 1], [], []>} : vector<2x32xf32>, vector<32x128xf32>, vector<2x128xf32> -> vector<2x128xf32>
    %257 = arith.addf %255, %256 : vector<2x128xf32>
    %258 = arith.negf %253 : vector<2x128xf32>
    %259 = math.exp %258 : vector<2x128xf32>
    %cst_64 = arith.constant 1.000000e+00 : f32
    %260 = vector.broadcast %cst_64 : f32 to vector<2x128xf32>
    %261 = arith.addf %260, %259 : vector<2x128xf32>
    %262 = arith.divf %260, %261 : vector<2x128xf32>
    %263 = math.tanh %253 : vector<2x128xf32>
    %264 = vector.extract_strided_slice %262 {offsets = [0, 0], sizes = [2, 32], strides = [1, 1]} : vector<2x128xf32> to vector<2x32xf32>
    %265 = vector.extract_strided_slice %262 {offsets = [0, 32], sizes = [2, 32], strides = [1, 1]} : vector<2x128xf32> to vector<2x32xf32>
    %266 = vector.extract_strided_slice %263 {offsets = [0, 64], sizes = [2, 32], strides = [1, 1]} : vector<2x128xf32> to vector<2x32xf32>
    %267 = vector.extract_strided_slice %262 {offsets = [0, 96], sizes = [2, 32], strides = [1, 1]} : vector<2x128xf32> to vector<2x32xf32>
    %268 = arith.mulf %265, %228 : vector<2x32xf32>
    %269 = arith.mulf %264, %266 : vector<2x32xf32>
    %270 = arith.addf %268, %269 : vector<2x32xf32>
    %271 = math.tanh %270 : vector<2x32xf32>
    %272 = arith.mulf %267, %271 : vector<2x32xf32>
    %c0_65 = arith.constant 0 : index
    %c5 = arith.constant 5 : index
    %c0_66 = arith.constant 0 : index
    %273 = vector.load %arg9[%c0_65, %c5, %c0_66] : memref<2x8x32xf32, #tpu.memory_space<vmem>>, vector<2x1x32xf32>
    %274 = vector.shape_cast %273 : vector<2x1x32xf32> to vector<2x32xf32>
    %275 = vector.shape_cast %272 : vector<2x32xf32> to vector<2x1x32xf32>
    tpu.vector_store %arg9[%c0_65, %c5, %c0_66], %275 {strides = array<i32>} : memref<2x8x32xf32, #tpu.memory_space<vmem>>, vector<2x1x32xf32>,
    %276 = arith.negf %257 : vector<2x128xf32>
    %277 = math.exp %276 : vector<2x128xf32>
    %cst_67 = arith.constant 1.000000e+00 : f32
    %278 = vector.broadcast %cst_67 : f32 to vector<2x128xf32>
    %279 = arith.addf %278, %277 : vector<2x128xf32>
    %280 = arith.divf %278, %279 : vector<2x128xf32>
    %281 = math.tanh %257 : vector<2x128xf32>
    %282 = vector.extract_strided_slice %280 {offsets = [0, 0], sizes = [2, 32], strides = [1, 1]} : vector<2x128xf32> to vector<2x32xf32>
    %283 = vector.extract_strided_slice %280 {offsets = [0, 32], sizes = [2, 32], strides = [1, 1]} : vector<2x128xf32> to vector<2x32xf32>
    %284 = vector.extract_strided_slice %281 {offsets = [0, 64], sizes = [2, 32], strides = [1, 1]} : vector<2x128xf32> to vector<2x32xf32>
    %285 = vector.extract_strided_slice %280 {offsets = [0, 96], sizes = [2, 32], strides = [1, 1]} : vector<2x128xf32> to vector<2x32xf32>
    %286 = arith.mulf %283, %246 : vector<2x32xf32>
    %287 = arith.mulf %282, %284 : vector<2x32xf32>
    %288 = arith.addf %286, %287 : vector<2x32xf32>
    %289 = math.tanh %288 : vector<2x32xf32>
    %290 = arith.mulf %285, %289 : vector<2x32xf32>
    %cst_68 = arith.constant dense<0.000000e+00> : vector<2x128xf32>
    %291 = tpu.matmul %290, %2, %cst_68 {dimension_numbers = #tpu.dot_dimension_numbers<[1], [0], [0], [1], [0, 0, 1, 1], [], []>} : vector<2x32xf32>, vector<32x128xf32>, vector<2x128xf32> -> vector<2x128xf32>
    %cst_69 = arith.constant dense<0.000000e+00> : vector<2x128xf32>
    %292 = tpu.matmul %272, %3, %cst_69 {dimension_numbers = #tpu.dot_dimension_numbers<[1], [0], [0], [1], [0, 0, 1, 1], [], []>} : vector<2x32xf32>, vector<32x128xf32>, vector<2x128xf32> -> vector<2x128xf32>
    %293 = arith.addf %291, %292 : vector<2x128xf32>
    %294 = vector.broadcast %5 : vector<1x128xf32> to vector<2x128xf32>
    %295 = arith.addf %293, %294 : vector<2x128xf32>
    %296 = vector.extract_strided_slice %11 {offsets = [0, 7, 0], sizes = [2, 1, 128], strides = [1, 1, 1]} : vector<2x8x128xf32> to vector<2x1x128xf32>
    %297 = vector.shape_cast %296 : vector<2x1x128xf32> to vector<2x128xf32>
    %cst_70 = arith.constant dense<0.000000e+00> : vector<2x128xf32>
    %298 = tpu.matmul %290, %1, %cst_70 {dimension_numbers = #tpu.dot_dimension_numbers<[1], [0], [0], [1], [0, 0, 1, 1], [], []>} : vector<2x32xf32>, vector<32x128xf32>, vector<2x128xf32> -> vector<2x128xf32>
    %299 = arith.addf %297, %298 : vector<2x128xf32>
    %300 = arith.negf %295 : vector<2x128xf32>
    %301 = math.exp %300 : vector<2x128xf32>
    %cst_71 = arith.constant 1.000000e+00 : f32
    %302 = vector.broadcast %cst_71 : f32 to vector<2x128xf32>
    %303 = arith.addf %302, %301 : vector<2x128xf32>
    %304 = arith.divf %302, %303 : vector<2x128xf32>
    %305 = math.tanh %295 : vector<2x128xf32>
    %306 = vector.extract_strided_slice %304 {offsets = [0, 0], sizes = [2, 32], strides = [1, 1]} : vector<2x128xf32> to vector<2x32xf32>
    %307 = vector.extract_strided_slice %304 {offsets = [0, 32], sizes = [2, 32], strides = [1, 1]} : vector<2x128xf32> to vector<2x32xf32>
    %308 = vector.extract_strided_slice %305 {offsets = [0, 64], sizes = [2, 32], strides = [1, 1]} : vector<2x128xf32> to vector<2x32xf32>
    %309 = vector.extract_strided_slice %304 {offsets = [0, 96], sizes = [2, 32], strides = [1, 1]} : vector<2x128xf32> to vector<2x32xf32>
    %310 = arith.mulf %307, %270 : vector<2x32xf32>
    %311 = arith.mulf %306, %308 : vector<2x32xf32>
    %312 = arith.addf %310, %311 : vector<2x32xf32>
    %313 = math.tanh %312 : vector<2x32xf32>
    %314 = arith.mulf %309, %313 : vector<2x32xf32>
    %c0_72 = arith.constant 0 : index
    %c6 = arith.constant 6 : index
    %c0_73 = arith.constant 0 : index
    %315 = vector.load %arg9[%c0_72, %c6, %c0_73] : memref<2x8x32xf32, #tpu.memory_space<vmem>>, vector<2x1x32xf32>
    %316 = vector.shape_cast %315 : vector<2x1x32xf32> to vector<2x32xf32>
    %317 = vector.shape_cast %314 : vector<2x32xf32> to vector<2x1x32xf32>
    tpu.vector_store %arg9[%c0_72, %c6, %c0_73], %317 {strides = array<i32>} : memref<2x8x32xf32, #tpu.memory_space<vmem>>, vector<2x1x32xf32>,
    %318 = arith.negf %299 : vector<2x128xf32>
    %319 = math.exp %318 : vector<2x128xf32>
    %cst_74 = arith.constant 1.000000e+00 : f32
    %320 = vector.broadcast %cst_74 : f32 to vector<2x128xf32>
    %321 = arith.addf %320, %319 : vector<2x128xf32>
    %322 = arith.divf %320, %321 : vector<2x128xf32>
    %323 = math.tanh %299 : vector<2x128xf32>
    %324 = vector.extract_strided_slice %322 {offsets = [0, 0], sizes = [2, 32], strides = [1, 1]} : vector<2x128xf32> to vector<2x32xf32>
    %325 = vector.extract_strided_slice %322 {offsets = [0, 32], sizes = [2, 32], strides = [1, 1]} : vector<2x128xf32> to vector<2x32xf32>
    %326 = vector.extract_strided_slice %323 {offsets = [0, 64], sizes = [2, 32], strides = [1, 1]} : vector<2x128xf32> to vector<2x32xf32>
    %327 = vector.extract_strided_slice %322 {offsets = [0, 96], sizes = [2, 32], strides = [1, 1]} : vector<2x128xf32> to vector<2x32xf32>
    %328 = arith.mulf %325, %288 : vector<2x32xf32>
    %329 = arith.mulf %324, %326 : vector<2x32xf32>
    %330 = arith.addf %328, %329 : vector<2x32xf32>
    %331 = math.tanh %330 : vector<2x32xf32>
    %332 = arith.mulf %327, %331 : vector<2x32xf32>
    %cst_75 = arith.constant dense<0.000000e+00> : vector<2x128xf32>
    %333 = tpu.matmul %332, %2, %cst_75 {dimension_numbers = #tpu.dot_dimension_numbers<[1], [0], [0], [1], [0, 0, 1, 1], [], []>} : vector<2x32xf32>, vector<32x128xf32>, vector<2x128xf32> -> vector<2x128xf32>
    %cst_76 = arith.constant dense<0.000000e+00> : vector<2x128xf32>
    %334 = tpu.matmul %314, %3, %cst_76 {dimension_numbers = #tpu.dot_dimension_numbers<[1], [0], [0], [1], [0, 0, 1, 1], [], []>} : vector<2x32xf32>, vector<32x128xf32>, vector<2x128xf32> -> vector<2x128xf32>
    %335 = arith.addf %333, %334 : vector<2x128xf32>
    %336 = vector.broadcast %5 : vector<1x128xf32> to vector<2x128xf32>
    %337 = arith.addf %335, %336 : vector<2x128xf32>
    %338 = arith.negf %337 : vector<2x128xf32>
    %339 = math.exp %338 : vector<2x128xf32>
    %cst_77 = arith.constant 1.000000e+00 : f32
    %340 = vector.broadcast %cst_77 : f32 to vector<2x128xf32>
    %341 = arith.addf %340, %339 : vector<2x128xf32>
    %342 = arith.divf %340, %341 : vector<2x128xf32>
    %343 = math.tanh %337 : vector<2x128xf32>
    %344 = vector.extract_strided_slice %342 {offsets = [0, 0], sizes = [2, 32], strides = [1, 1]} : vector<2x128xf32> to vector<2x32xf32>
    %345 = vector.extract_strided_slice %342 {offsets = [0, 32], sizes = [2, 32], strides = [1, 1]} : vector<2x128xf32> to vector<2x32xf32>
    %346 = vector.extract_strided_slice %343 {offsets = [0, 64], sizes = [2, 32], strides = [1, 1]} : vector<2x128xf32> to vector<2x32xf32>
    %347 = vector.extract_strided_slice %342 {offsets = [0, 96], sizes = [2, 32], strides = [1, 1]} : vector<2x128xf32> to vector<2x32xf32>
    %348 = arith.mulf %345, %312 : vector<2x32xf32>
    %349 = arith.mulf %344, %346 : vector<2x32xf32>
    %350 = arith.addf %348, %349 : vector<2x32xf32>
    %351 = math.tanh %350 : vector<2x32xf32>
    %352 = arith.mulf %347, %351 : vector<2x32xf32>
    %c0_78 = arith.constant 0 : index
    %c7 = arith.constant 7 : index
    %c0_79 = arith.constant 0 : index
    %353 = vector.load %arg9[%c0_78, %c7, %c0_79] : memref<2x8x32xf32, #tpu.memory_space<vmem>>, vector<2x1x32xf32>
    %354 = vector.shape_cast %353 : vector<2x1x32xf32> to vector<2x32xf32>
    %355 = vector.shape_cast %352 : vector<2x32xf32> to vector<2x1x32xf32>
    tpu.vector_store %arg9[%c0_78, %c7, %c0_79], %355 {strides = array<i32>} : memref<2x8x32xf32, #tpu.memory_space<vmem>>, vector<2x1x32xf32>,
    %c0_80 = arith.constant 0 : index
    %c0_81 = arith.constant 0 : index
    %c0_82 = arith.constant 0 : index
    %356 = vector.load %arg7[%c0_80, %c0_81, %c0_82] : memref<2x2x32xf32, #tpu.memory_space<vmem>>, vector<1x2x32xf32>
    %357 = vector.shape_cast %356 : vector<1x2x32xf32> to vector<2x32xf32>
    %358 = vector.shape_cast %332 : vector<2x32xf32> to vector<1x2x32xf32>
    tpu.vector_store %arg7[%c0_80, %c0_81, %c0_82], %358 {strides = array<i32>} : memref<2x2x32xf32, #tpu.memory_space<vmem>>, vector<1x2x32xf32>,
    %c0_83 = arith.constant 0 : index
    %c0_84 = arith.constant 0 : index
    %c0_85 = arith.constant 0 : index
    %359 = vector.load %arg8[%c0_83, %c0_84, %c0_85] : memref<2x2x32xf32, #tpu.memory_space<vmem>>, vector<1x2x32xf32>
    %360 = vector.shape_cast %359 : vector<1x2x32xf32> to vector<2x32xf32>
    %361 = vector.shape_cast %330 : vector<2x32xf32> to vector<1x2x32xf32>
    tpu.vector_store %arg8[%c0_83, %c0_84, %c0_85], %361 {strides = array<i32>} : memref<2x2x32xf32, #tpu.memory_space<vmem>>, vector<1x2x32xf32>,
    %c1_86 = arith.constant 1 : index
    %c0_87 = arith.constant 0 : index
    %c0_88 = arith.constant 0 : index
    %362 = vector.load %arg7[%c1_86, %c0_87, %c0_88] : memref<2x2x32xf32, #tpu.memory_space<vmem>>, vector<1x2x32xf32>
    %363 = vector.shape_cast %362 : vector<1x2x32xf32> to vector<2x32xf32>
    %364 = vector.shape_cast %352 : vector<2x32xf32> to vector<1x2x32xf32>
    tpu.vector_store %arg7[%c1_86, %c0_87, %c0_88], %364 {strides = array<i32>} : memref<2x2x32xf32, #tpu.memory_space<vmem>>, vector<1x2x32xf32>,
    %c1_89 = arith.constant 1 : index
    %c0_90 = arith.constant 0 : index
    %c0_91 = arith.constant 0 : index
    %365 = vector.load %arg8[%c1_89, %c0_90, %c0_91] : memref<2x2x32xf32, #tpu.memory_space<vmem>>, vector<1x2x32xf32>
    %366 = vector.shape_cast %365 : vector<1x2x32xf32> to vector<2x32xf32>
    %367 = vector.shape_cast %350 : vector<2x32xf32> to vector<1x2x32xf32>
    tpu.vector_store %arg8[%c1_89, %c0_90, %c0_91], %367 {strides = array<i32>} : memref<2x2x32xf32, #tpu.memory_space<vmem>>, vector<1x2x32xf32>,
    %c0_92 = arith.constant 0 : index
    %c0_93 = arith.constant 0 : index
    %368 = vector.load %arg5[%c0_92, %c0_93] : memref<67x16xf32, #tpu.memory_space<vmem>>, vector<32x16xf32>
    %c32_94 = arith.constant 32 : index
    %c0_95 = arith.constant 0 : index
    %369 = vector.load %arg5[%c32_94, %c0_95] : memref<67x16xf32, #tpu.memory_space<vmem>>, vector<16x16xf32>
    %c48 = arith.constant 48 : index
    %c0_96 = arith.constant 0 : index
    %370 = vector.load %arg5[%c48, %c0_96] : memref<67x16xf32, #tpu.memory_space<vmem>>, vector<16x1xf32>
    %c64_97 = arith.constant 64 : index
    %c0_98 = arith.constant 0 : index
    %371 = vector.load %arg5[%c64_97, %c0_98] : memref<67x16xf32, #tpu.memory_space<vmem>>, vector<1x16xf32>
    %c65 = arith.constant 65 : index
    %c0_99 = arith.constant 0 : index
    %372 = vector.load %arg5[%c65, %c0_99] : memref<67x16xf32, #tpu.memory_space<vmem>>, vector<1x16xf32>
    %c66 = arith.constant 66 : index
    %c0_100 = arith.constant 0 : index
    %373 = vector.load %arg5[%c66, %c0_100] : memref<67x16xf32, #tpu.memory_space<vmem>>, vector<1x1xf32>
    %c0_101 = arith.constant 0 : index
    %c0_102 = arith.constant 0 : index
    %c0_103 = arith.constant 0 : index
    %374 = vector.load %arg9[%c0_101, %c0_102, %c0_103] : memref<2x8x32xf32, #tpu.memory_space<vmem>>, vector<2x8x32xf32>
    %375 = vector.shape_cast %374 : vector<2x8x32xf32> to vector<16x32xf32>
    %cst_104 = arith.constant dense<0.000000e+00> : vector<16x16xf32>
    %376 = tpu.matmul %375, %368, %cst_104 {dimension_numbers = #tpu.dot_dimension_numbers<[1], [0], [0], [1], [0, 0, 1, 1], [], []>} : vector<16x32xf32>, vector<32x16xf32>, vector<16x16xf32> -> vector<16x16xf32>
    %377 = vector.broadcast %371 : vector<1x16xf32> to vector<16x16xf32>
    %378 = arith.addf %376, %377 : vector<16x16xf32>
    %cst_105 = arith.constant 0.000000e+00 : f32
    %379 = vector.broadcast %cst_105 : f32 to vector<16x16xf32>
    %380 = arith.maximumf %378, %379 : vector<16x16xf32>
    %cst_106 = arith.constant dense<0.000000e+00> : vector<16x16xf32>
    %381 = tpu.matmul %380, %369, %cst_106 {dimension_numbers = #tpu.dot_dimension_numbers<[1], [0], [0], [1], [0, 0, 1, 1], [], []>} : vector<16x16xf32>, vector<16x16xf32>, vector<16x16xf32> -> vector<16x16xf32>
    %382 = vector.broadcast %372 : vector<1x16xf32> to vector<16x16xf32>
    %383 = arith.addf %381, %382 : vector<16x16xf32>
    %cst_107 = arith.constant 0.000000e+00 : f32
    %384 = vector.broadcast %cst_107 : f32 to vector<16x16xf32>
    %385 = arith.maximumf %383, %384 : vector<16x16xf32>
    %cst_108 = arith.constant dense<0.000000e+00> : vector<16x1xf32>
    %386 = tpu.matmul %385, %370, %cst_108 {dimension_numbers = #tpu.dot_dimension_numbers<[1], [0], [0], [1], [0, 0, 1, 1], [], []>} : vector<16x16xf32>, vector<16x1xf32>, vector<16x1xf32> -> vector<16x1xf32>
    %387 = vector.broadcast %373 : vector<1x1xf32> to vector<16x1xf32>
    %388 = arith.addf %386, %387 : vector<16x1xf32>
    %389 = arith.negf %388 : vector<16x1xf32>
    %390 = math.exp %389 : vector<16x1xf32>
    %cst_109 = arith.constant 1.000000e+00 : f32
    %391 = vector.broadcast %cst_109 : f32 to vector<16x1xf32>
    %392 = arith.addf %391, %390 : vector<16x1xf32>
    %393 = arith.divf %391, %392 : vector<16x1xf32>
    %c0_110 = arith.constant 0 : index
    %c0_111 = arith.constant 0 : index
    %394 = vector.load %arg6[%c0_110, %c0_111] : memref<16x1xf32, #tpu.memory_space<vmem>>, vector<16x1xf32>
    tpu.vector_store %arg6[%c0_110, %c0_111], %393 {strides = array<i32>} : memref<16x1xf32, #tpu.memory_space<vmem>>, vector<16x1xf32>,
    return
  }
}

</mosaic_0001>

<bundles_post_ra>
// kernel: tpu_custom_call.1
= control target key start
LH: loop header
LB: loop body
LE: loop exit
PB: predicated region body
PF: predicated region fallthrough
CT: control target
= control target key end

     0   :  { %14 = vsyncpa [#allocation4], 0  ;;  %s4966_s0 = inlined_call_operand.vmem [shape: f32[2,8,32], index: 0, kind: input, shape index: {}]   ;;  %s4967_s1 = inlined_call_operand.vmem [shape: f32[2,2,32], index: 1, kind: input, shape index: {}]   ;;  %s4968_s2 = inlined_call_operand.vmem [shape: f32[2,2,32], index: 2, kind: input, shape index: {}]   ;;  %s4969_s3 = inlined_call_operand.hbm [shape: f32[128,128], index: 3, kind: input, shape index: {}]   ;;  %s4970_s4 = inlined_call_operand.vmem [shape: f32[2,128], index: 4, kind: input, shape index: {}]   ;;  %s4971_s5 = inlined_call_operand.vmem [shape: f32[67,16], index: 5, kind: input, shape index: {}]   ;;  %s4972_s6 = inlined_call_operand.vmem [shape: f32[16,1], index: 6, kind: output, shape index: {0}]   ;;  %s4973_s7 = inlined_call_operand.hbm [shape: f32[2,2,32], index: 7, kind: output, shape index: {1}]   ;;  %s4974_s8 = inlined_call_operand.hbm [shape: f32[2,2,32], index: 8, kind: output, shape index: {2}]  }
   0x1   :  { %15 = vsyncpa [#allocation5], 0 }
   0x2   :  { %16 = vsyncpa [#allocation8], 0  ;;  %s4265_s27 = smov [#allocation3]   ;;  %s4193_s9 = scalar_lea.hbm %s4969_s3, 2048 }
   0x3   :  { %s28_s28 = sshll.u32 %s4265_s27, 4  ;;  %p4194_p0 = scmp.ne.s32.totalorder %s4969_s3, %s4193_s9  ;;  %s29_s28 = int_to_ptr.vmem [resolvable:$true] %s28_s28 }
   0x4   :  { %p4197_p1 = scmp.lt.u32.totalorder %s4193_s9, %s4969_s3 }
   0x6   :  { %p4199_p2 = pnand %p4197_p1, %p4194_p0 }
   0x8   :  { %4202 = shalt.err (!%p4199_p2)
}
   0x9   :  { %s4203_s14 = scalar_lea.vmem %s29_s28, 2048  ;;  %p4208_p4 = scmp.lt.s32.totalorder %s29_s28, %s29_s28 }
   0xa   :  { %p4204_p3 = scmp.ne.s32.totalorder %s29_s28, %s4203_s14  ;;  %p4209_p5 = scmp.lt.s32.totalorder %s4203_s14, %s4203_s14 }
   0xc   :  { %p4210_p6 = por %p4209_p5, %p4208_p4 }
   0xe   :  { %p4211_p7 = pnand %p4210_p6, %p4204_p3 }
  0x10   :  { %4214 = shalt.err (!%p4211_p7)
}
  0x11   :  { %s4266_s15 = smov 128   ;;  %s4267_s16 = smov 8  }
  0x12   :  { %34 = dma.hbm_to_vmem [thread:$0]  %s4969_s3, 2048, %s29_s28, [#allocation4], %s4266_s15, %s4266_s15, %s4267_s16  }
  0x13   :  { %4259 = dma.done.wait [#allocation4], 2048  }
  0x14   :  { %4260 = vsyncadd [#allocation4], 4294965248  ;;  %v4268_v0 = vmov 0.0|0.0   ;;  %vm4269_vm0 = vmmov 0   ;;  %v4270_v1 = vmov 0.0   ;;  %v42_v2 = vld [vmem:[#allocation3] sm:$0xff] }
  0x15   :  { %3819 = vmatprep.subr.bf16.mxu1 %v4268_v0  ;;  %3530 = vmatprep.mubr.msk.f32.mxu1 %vm4269_vm0, %v4270_v1  ;;  %v43_v3 = vld [vmem:[#allocation3 + $0x8] sm:$0xff]  ;;  %v46_v4 = vld [vmem:[#allocation3 + $0x20] sm:$0xff]  ;;  %vm66_vm1 = vcmask 261120   ;;  %v44_v7 = vld [vmem:[#allocation3 + $0x10] sm:$0xff]  ;;  %s4271_s22 = smov 32   ;;  %vm365_vm2 = vcmask 1041409  }
  0x16   :  { %v3811_v5 = vpack.c.bf16 %v43_v3, %v42_v2  ;;  %v47_v6 = vld [vmem:[#allocation3 + $0x28] sm:$0xff]  ;;  %v45_v8 = vld [vmem:[#allocation3 + $0x18] sm:$0xff]  ;;  %v48_v11 = vld [vmem:[#allocation3 + $0x30] sm:$0xff]  ;;  %vm587_vm3 = vcmask 253952   ;;  %vm2955_vm4 = vcmask 261127   ;;  %vm2973_vm5 = vcmask 254976  }
  0x17   :  { %v4338_v9 = vpack.c.bf16 %v47_v6, %v46_v4  ;;  %v3815_v10 = vpack.c.bf16 %v45_v8, %v44_v7  ;;  %v49_v12 = vld [vmem:[#allocation3 + $0x38] sm:$0xff]  ;;  %v60_v13 = vld [vmem:[%s4966_s0] sm:$0xff]  ;;  %v54_v51 = vld [vmem:[#allocation3 + $0x60] sm:$0xff]  ;;  %vm3085_vm6 = vcmask 130048   ;;  %s4275_s9 = smov [#allocation6]   ;;  %s4276_s11 = smov [#allocation7]  }
  0x18   :  { %3812 = vmatprep.subr.bf16.mxu0 %v3811_v5  ;;  %3519 = vmatprep.mubr.msk.f32.mxu0 %vm66_vm1, %v60_v13  ;;  %v149_v14 = vld [vmem:[%s4968_s2] sm:$0x3]  ;;  %v4348_v15 = vpack.c.bf16 %v49_v12, %v48_v11  ;;  %v61_v18 = vld [vmem:[%s4966_s0 + $0x8] sm:$0xff]  ;;  %s4272_s0 = smov 64   ;;  %v55_v52 = vld [vmem:[#allocation3 + $0x68] sm:$0xff]  ;;  %s3276_s10 = sshll.u32 %s4275_s9, 4  ;;  %s3277_s10 = int_to_ptr.vmem [resolvable:$true] %s3276_s10 }
  0x19   :  { %3821 = vmatpush3.bf16.msra.mxu1 %v4338_v9  ;;  %3814 = vmatpush3.bf16.msra.mxu0 %v3811_v5  ;;  %v248_v16 = vrot.slane %v149_v14, 1  ;;  %v148_v17 = vld [vmem:[%s4967_s1] sm:$0x3]  ;;  %v4387_v54 = vpack.c.bf16 %v55_v52, %v54_v51  ;;  %v57_v55 = vld [vmem:[#allocation3 + $0x78] sm:$0xff]  ;;  %v50_v56 = vld [vmem:[#allocation3 + $0x40] sm:$0xff]  ;;  %s4215_s12 = scalar_lea.vmem %s3277_s10, 64  ;;  %p4220_p9 = scmp.lt.s32.totalorder %s3277_s10, %s3277_s10 }
  0x1a   :  { %3822 = vmatprep.subr.bf16.mxu1 %v4268_v0  ;;  %3816 = vmatprep.subr.bf16.mxu0 %v3815_v10  ;;  %v3306_v19 = vld [vmem:[%s4970_s4] ss:$0 sm:$0xff]  ;;  %v51_v57 = vld [vmem:[#allocation3 + $0x48] sm:$0xff]  ;;  %v53_v59 = vld [vmem:[#allocation3 + $0x58] sm:$0xff]  ;;  %p4216_p8 = scmp.ne.s32.totalorder %s3277_s10, %s4215_s12  ;;  %p4221_p10 = scmp.lt.s32.totalorder %s4215_s12, %s4215_s12 }
  0x1b   :  { %251 = vrot.lane.b32.xlu1 %v248_v16, %s4271_s22  ;;  %v56_v53 = vld [vmem:[#allocation3 + $0x70] sm:$0xff]  ;;  %v4392_v61 = vpack.c.bf16 %v51_v57, %v50_v56 }
  0x1c   :  { %v52_v58 = vld [vmem:[#allocation3 + $0x50] sm:$0xff]  ;;  %v4390_v60 = vpack.c.bf16 %v57_v55, %v56_v53  ;;  %p4222_p11 = por %p4221_p10, %p4220_p9 }
  0x1d   :  { %3824 = vmatpush3.bf16.msra.mxu1 %v4348_v15  ;;  %3818 = vmatpush3.bf16.msra.mxu0 %v3815_v10  ;;  %v4396_v63 = vpack.c.bf16 %v53_v59, %v52_v58  ;;  %v3309_v2 = vld [vmem:[%s4967_s1 + $0x2] sm:$0x3] }
  0x1e   :  { %3825 = vmatprep.subr.bf16.mxu0 %v4268_v0  ;;  %3831 = vmatprep.subr.bf16.mxu1 %v4268_v0  ;;  %p4223_p12 = pnand %p4222_p11, %p4216_p8 }
  0x1f   :  { %249 = vrot.lane.b32.xlu1 %v149_v14, %s4271_s22  ;;  %v4434_v14 = vld [vmem:[%s4970_s4 + $0x1] ss:$0 sm:$0xff] }
  0x20   :  { %3531 = vmatmul.mubr.msk.f32.vlgmr.msra.gmra.mrb[0].mxu1 %vm66_vm1, %v148_v17  ;;  %3520 = vmatmul.mubr.msk.f32.vlgmr.msra.gmra.mrb[0].mxu0 %vm66_vm1, %v61_v18 }
  0x21   :  { %3541 = vmatprep.mubr.msk.f32.mxu0 %vm4269_vm0, %v4270_v1  ;;  %3552 = vmatprep.mubr.msk.f32.mxu1 %vm4269_vm0, %v4270_v1 }
  0x22   :  { %3827 = vmatpush3.bf16.msra.mxu0 %v4387_v54  ;;  %3833 = vmatpush3.bf16.msra.mxu1 %v4392_v61 }
  0x23   :  { %3828 = vmatprep.subr.bf16.mxu0 %v4268_v0  ;;  %3834 = vmatprep.subr.bf16.mxu1 %v4268_v0 }
  0x26   :  { %3830 = vmatpush3.bf16.msra.mxu0 %v4390_v60  ;;  %3836 = vmatpush3.bf16.msra.mxu1 %v4396_v63 }
  0x27   :  { %3837 = vmatprep.subr.bf16.mxu0 %v4268_v0  ;;  %3843 = vmatprep.subr.bf16.mxu1 %v4268_v0 }
  0x29   :  { %3542 = vmatmul.mubr.msk.f32.vlgmr.msra.gmra.mrb[2].mxu0 %vm66_vm1, %v3309_v2 }
  0x2a   :  { %3839 = vmatpush3.bf16.msra.mxu0 %v4338_v9  ;;  %3563 = vmatprep.mubr.msk.f32.mxu0 %vm4269_vm0, %v4270_v1 }
  0x2b   :  { %3840 = vmatprep.subr.bf16.mxu0 %v4268_v0 }
  0x2e   :  { %3842 = vmatpush3.bf16.msra.mxu0 %v4348_v15 }
  0x2f   :  { %3849 = vmatprep.subr.bf16.mxu0 %v4268_v0 }
  0x8d   :  { %v252_v43 = vpop.permute.xlu1 %251 }
  0x91   :  { %v250_v45 = vpop.permute.xlu1 %249 }
  0xf3   :  { %v223_v20 = vpop.f32.mrb[0].mxu1  ;;  %v3521_v21 = vpop.f32.mrb[0].mxu0 }
  0xf4   :  { %v228_v22 = vrot.slane %v223_v20, 1  ;;  %v4371_v23 = vadd.f32 %v3521_v21, %v3306_v19  ;;  %v3532_v24 = vpop.f32.mrb[1].mxu1  ;;  %v139_v25 = vpop.f32.mrb[1].mxu0 }
  0xf5   :  { %v4373_v26 = vadd.f32 %v3306_v19, %v139_v25 }
  0xf6   :  { %v232_v27 = vadd.f32 %v228_v22, %v4371_v23 }
  0xf7   :  { %v231_v28 = vadd.f32 %v223_v20, %v4373_v26 }
  0xf8   :  { %3992 = vtanh.f32 %v232_v27  ;;  %v3313_v31 = vmul.f32 -1.442695, %v232_v27 }
  0xf9   :  { %3994 = vtanh.f32 %v231_v28  ;;  %v3312_v32 = vmul.f32 -1.442695, %v231_v28 }
  0xfa   :  { %3996 = vpow2.f32 %v3313_v31 }
  0xfb   :  { %3998 = vpow2.f32 %v3312_v32 }
  0xfc   :  { %v358_v11 = vpop.f32.mrb[2].mxu0 }
  0xfd   :  { %v3543_v12 = vpop.f32.mrb[3].mxu0 }
 0x102   :  { %v3993_v29 = vpop.eup %3992 }
 0x103   :  { %261 = vrot.lane.b32.xlu0 %v3993_v29, %s4272_s0  ;;  %v3995_v30 = vpop.eup %3994 }
 0x104   :  { %v3997_v33 = vpop.eup %3996 }
 0x105   :  { %v240_v34 = vadd.f32 1.0, %v3997_v33  ;;  %v3999_v35 = vpop.eup %3998 }
 0x106   :  { %v239_v36 = vadd.f32 1.0, %v3999_v35 }
 0x107   :  { %259 = vrot.lane.b32.xlu0 %v3995_v30, %s4272_s0  ;;  %4000 = vrcp.f32 %v240_v34  ;;  %v3310_v30 = vld [vmem:[%s4968_s2 + $0x2] sm:$0x3]  ;;  %s3288_s2 = sshll.u32 %s4276_s11, 4  ;;  %s3289_s2 = int_to_ptr.vmem [resolvable:$true] %s3288_s2 }
 0x108   :  { %4002 = vrcp.f32 %v239_v36 }
 0x111   :  { %v4001_v37 = vpop.eup %4000 }
 0x112   :  { %v4003_v40 = vpop.eup %4002  ;;  %v256_v44 = vmul.f32 %v4001_v37, %v252_v43 }
 0x113   :  { %v255_v48 = vmul.f32 %v4003_v40, %v250_v45 }
 0x175   :  { %v262_v38 = vpop.permute.xlu0 %261 }
 0x176   :  { %v266_v39 = vmul.f32 %v4001_v37, %v262_v38 }
 0x178   :  { %271 = vrot.lane.b32.xlu0 %v266_v39, %s4271_s22 }
 0x179   :  { %v260_v41 = vpop.permute.xlu0 %259 }
 0x17a   :  { %v265_v42 = vmul.f32 %v4003_v40, %v260_v41 }
 0x17c   :  { %269 = vrot.lane.b32.xlu1 %v265_v42, %s4271_s22 }
 0x1ea   :  { %v272_v46 = vpop.permute.xlu0 %271 }
 0x1eb   :  { %v4381_v47 = vadd.f32 %v272_v46, %v256_v44 }
 0x1ed   :  { %4004 = vtanh.f32 %v4381_v47  ;;  %v607_v55 = vrot.slane %v4381_v47, 7 }
 0x1ee   :  { %v270_v49 = vpop.permute.xlu1 %269 }
 0x1ef   :  { %v4384_v50 = vadd.f32 %v270_v49, %v255_v48 }
 0x1f1   :  { %4006 = vtanh.f32 %v4384_v50  ;;  %v606_v56 = vrot.slane %v4384_v50, 7 }
 0x1f7   :  { %v4005_v62 = vpop.eup %4004 }
 0x1f8   :  { %283 = vrot.lane.b32.xlu0 %v4005_v62, %s4272_s0 }
 0x1fb   :  { %v4007_v3 = vpop.eup %4006 }
 0x1fc   :  { %281 = vrot.lane.b32.xlu1 %v4007_v3, %s4272_s0 }
 0x26a   :  { %v284_v4 = vpop.permute.xlu0 %283 }
 0x26b   :  { %v288_v5 = vmul.f32 %v4001_v37, %v284_v4 }
 0x26d   :  { %v364_v7 = vrot.slane %v288_v5, 7 }
 0x26e   :  { %v282_v6 = vpop.permute.xlu1 %281 }
 0x26f   :  { %v287_v8 = vmul.f32 %v4003_v40, %v282_v6 }
 0x271   :  { %v366_v10 = vsel %vm365_vm2, %v364_v7, %v287_v8 }
 0x272   :  { %367 = vrot.lane.b32.xlu0 %v366_v10, %s4271_s22 }
 0x2e4   :  { %v368_v13 = vpop.permute.xlu0 %367 }
 0x2e5   :  { %3553 = vmatmul.mubr.msk.f32.vlgmr.msra.gmra.mrb[2].mxu1 %vm66_vm1, %v368_v13  ;;  %3564 = vmatmul.mubr.msk.f32.vlgmr.msra.gmra.mrb[4].mxu0 %vm66_vm1, %v368_v13 }
 0x2e6   :  { %3845 = vmatpush3.bf16.msra.mxu1 %v4387_v54  ;;  %3851 = vmatpush3.bf16.msra.mxu0 %v4392_v61 }
 0x2e7   :  { %3846 = vmatprep.subr.bf16.mxu1 %v4268_v0  ;;  %3574 = vmatprep.mubr.msk.f32.mxu1 %vm4269_vm0, %v4270_v1 }
 0x2e8   :  { %3852 = vmatprep.subr.bf16.mxu0 %v4268_v0  ;;  %3585 = vmatprep.mubr.msk.f32.mxu0 %vm4269_vm0, %v4270_v1 }
 0x2ea   :  { %3848 = vmatpush3.bf16.msra.mxu1 %v4390_v60  ;;  %3854 = vmatpush3.bf16.msra.mxu0 %v4396_v63 }
 0x2eb   :  { %3855 = vmatprep.subr.bf16.mxu1 %v4268_v0  ;;  %3861 = vmatprep.subr.bf16.mxu0 %v4268_v0 }
 0x3b8   :  { %v437_v16 = vpop.f32.mrb[2].mxu1  ;;  %v512_v17 = vpop.f32.mrb[4].mxu0 }
 0x3b9   :  { %v438_v18 = vadd.f32 %v437_v16, %v358_v11  ;;  %v517_v19 = vrot.slane %v512_v17, 7  ;;  %v3554_v20 = vpop.f32.mrb[3].mxu1  ;;  %v3565_v21 = vpop.f32.mrb[5].mxu0  ;;  %v521_v24 = vadd.f32 %v512_v17, %v4371_v23 }
 0x3bb   :  { %v445_v22 = vadd.f32 %v4434_v14, %v438_v18  ;;  %v520_v25 = vadd.f32 %v517_v19, %v4373_v26  ;;  %v3320_v32 = vmul.f32 -1.442695, %v521_v24 }
 0x3bd   :  { %4008 = vtanh.f32 %v445_v22  ;;  %v3318_v31 = vmul.f32 -1.442695, %v445_v22  ;;  %v3319_v33 = vmul.f32 -1.442695, %v520_v25 }
 0x3be   :  { %4010 = vtanh.f32 %v521_v24 }
 0x3bf   :  { %4012 = vtanh.f32 %v520_v25 }
 0x3c0   :  { %4014 = vpow2.f32 %v3318_v31 }
 0x3c1   :  { %4016 = vpow2.f32 %v3320_v32 }
 0x3c2   :  { %4018 = vpow2.f32 %v3319_v33 }
 0x3c7   :  { %v4009_v27 = vpop.eup %4008 }
 0x3c8   :  { %535 = vrot.lane.b32.xlu1 %v4009_v27, %s4272_s0  ;;  %v4011_v28 = vpop.eup %4010 }
 0x3c9   :  { %v4013_v29 = vpop.eup %4012 }
 0x3ca   :  { %614 = vrot.lane.b32.xlu0 %v4013_v29, %s4272_s0  ;;  %v4015_v34 = vpop.eup %4014 }
 0x3cb   :  { %v4017_v35 = vpop.eup %4016  ;;  %v525_v36 = vadd.f32 1.0, %v4015_v34 }
 0x3cc   :  { %616 = vrot.lane.b32.xlu1 %v4011_v28, %s4272_s0  ;;  %v4019_v37 = vpop.eup %4018  ;;  %v597_v38 = vadd.f32 1.0, %v4017_v35 }
 0x3cd   :  { %4020 = vrcp.f32 %v525_v36  ;;  %v596_v39 = vadd.f32 1.0, %v4019_v37 }
 0x3ce   :  { %530 = vrot.lane.b32.xlu0 %v3310_v30, %s4271_s22  ;;  %4022 = vrcp.f32 %v597_v38 }
 0x3cf   :  { %4024 = vrcp.f32 %v596_v39 }
 0x3d7   :  { %v4021_v40 = vpop.eup %4020 }
 0x3d8   :  { %v4023_v43 = vpop.eup %4022 }
 0x3d9   :  { %v4025_v44 = vpop.eup %4024  ;;  %v611_v59 = vmul.f32 %v4023_v43, %v607_v55 }
 0x3da   :  { %v610_v58 = vmul.f32 %v4025_v44, %v606_v56 }
 0x43a   :  { %v536_v41 = vpop.permute.xlu1 %535 }
 0x43b   :  { %v538_v42 = vmul.f32 %v4021_v40, %v536_v41 }
 0x43c   :  { %v615_v45 = vpop.permute.xlu0 %614 }
 0x43d   :  { %540 = vrot.lane.b32.xlu1 %v538_v42, %s4271_s22  ;;  %v620_v48 = vmul.f32 %v4025_v44, %v615_v45 }
 0x43e   :  { %v617_v46 = vpop.permute.xlu1 %616 }
 0x43f   :  { %v621_v49 = vmul.f32 %v4023_v43, %v617_v46  ;;  %624 = vrot.lane.b32.xlu0 %v620_v48, %s4271_s22 }
 0x440   :  { %v531_v51 = vpop.permute.xlu0 %530 }
 0x441   :  { %626 = vrot.lane.b32.xlu1 %v621_v49, %s4271_s22  ;;  %v533_v52 = vmul.f32 %v4021_v40, %v531_v51 }
 0x4af   :  { %v541_v53 = vpop.permute.xlu1 %540 }
 0x4b0   :  { %v4451_v57 = vadd.f32 %v541_v53, %v533_v52 }
 0x4b1   :  { %v625_v62 = vpop.permute.xlu0 %624 }
 0x4b2   :  { %4026 = vtanh.f32 %v4451_v57  ;;  %v4454_v3 = vadd.f32 %v625_v62, %v610_v58 }
 0x4b3   :  { %v627_v2 = vpop.permute.xlu1 %626 }
 0x4b4   :  { %v4456_v4 = vadd.f32 %v627_v2, %v611_v59  ;;  %4028 = vtanh.f32 %v4454_v3  ;;  %v953_v58 = vrot.slane %v4454_v3, 7 }
 0x4b6   :  { %4030 = vtanh.f32 %v4456_v4 }
 0x4bc   :  { %v4027_v5 = vpop.eup %4026 }
 0x4bd   :  { %546 = vrot.lane.b32.xlu0 %v4027_v5, %s4272_s0 }
 0x4be   :  { %v4029_v47 = vpop.eup %4028 }
 0x4bf   :  { %636 = vrot.lane.b32.xlu1 %v4029_v47, %s4272_s0 }
 0x4c0   :  { %v4031_v50 = vpop.eup %4030 }
 0x4c1   :  { %638 = vrot.lane.b32.xlu0 %v4031_v50, %s4272_s0  ;;  %v954_v50 = vrot.slane %v4456_v4, 7 }
 0x52f   :  { %v547_v6 = vpop.permute.xlu0 %546 }
 0x530   :  { %v4463_v7 = vmul.f32 %v4021_v40, %v547_v6 }
 0x531   :  { %v637_v8 = vpop.permute.xlu1 %636 }
 0x532   :  { %644 = vrot.lane.b32.xlu1 %v4463_v7, %s4271_s22  ;;  %v642_v10 = vmul.f32 %v4025_v44, %v637_v8 }
 0x533   :  { %v639_v11 = vpop.permute.xlu0 %638 }
 0x534   :  { %v643_v12 = vmul.f32 %v4023_v43, %v639_v11  ;;  %v720_v13 = vrot.slane %v642_v10, 1 }
 0x536   :  { %v721_v16 = vsel %vm365_vm2, %v643_v12, %v720_v13 }
 0x537   :  { %722 = vrot.lane.b32.xlu0 %v721_v16, %s4271_s22 }
 0x5a4   :  { %v645_v17 = vpop.permute.xlu1 %644 }
 0x5a5   :  { %3575 = vmatmul.mubr.msk.f32.vlgmr.msra.gmra.mrb[4].mxu1 %vm66_vm1, %v645_v17 }
 0x5a6   :  { %3857 = vmatpush3.bf16.msra.mxu1 %v4338_v9  ;;  %3596 = vmatprep.mubr.msk.f32.mxu1 %vm4269_vm0, %v4270_v1 }
 0x5a7   :  { %3858 = vmatprep.subr.bf16.mxu1 %v4268_v0 }
 0x5a9   :  { %v723_v18 = vpop.permute.xlu0 %722 }
 0x5aa   :  { %3860 = vmatpush3.bf16.msra.mxu1 %v4348_v15  ;;  %3586 = vmatmul.mubr.msk.f32.vlgmr.msra.gmra.mrb[6].mxu0 %vm66_vm1, %v723_v18 }
 0x5ab   :  { %3867 = vmatprep.subr.bf16.mxu1 %v4268_v0  ;;  %3863 = vmatpush3.bf16.msra.mxu0 %v4387_v54 }
 0x5ac   :  { %3864 = vmatprep.subr.bf16.mxu0 %v4268_v0  ;;  %3607 = vmatprep.mubr.msk.f32.mxu0 %vm4269_vm0, %v4270_v1 }
 0x5ad   :  { %3597 = vmatmul.mubr.msk.f32.vlgmr.msra.gmra.mrb[6].mxu1 %vm66_vm1, %v723_v18 }
 0x5ae   :  { %3869 = vmatpush3.bf16.msra.mxu1 %v4392_v61  ;;  %3618 = vmatprep.mubr.msk.f32.mxu1 %vm4269_vm0, %v4270_v1 }
 0x5af   :  { %3870 = vmatprep.subr.bf16.mxu1 %v4268_v0  ;;  %3866 = vmatpush3.bf16.msra.mxu0 %v4390_v60 }
 0x5b0   :  { %3873 = vmatprep.subr.bf16.mxu0 %v4268_v0 }
 0x5b2   :  { %3872 = vmatpush3.bf16.msra.mxu1 %v4396_v63 }
 0x5b3   :  { %3879 = vmatprep.subr.bf16.mxu1 %v4268_v0 }
 0x678   :  { %v714_v19 = vpop.f32.mrb[4].mxu1 }
 0x679   :  { %v3576_v20 = vpop.f32.mrb[5].mxu1 }
 0x67d   :  { %v792_v21 = vpop.f32.mrb[6].mxu0 }
 0x67e   :  { %v793_v22 = vadd.f32 %v792_v21, %v714_v19  ;;  %v3587_v24 = vpop.f32.mrb[7].mxu0 }
 0x680   :  { %v863_v25 = vpop.f32.mrb[6].mxu1  ;;  %v796_v30 = vadd.f32 %v4434_v14, %v793_v22 }
 0x681   :  { %v868_v27 = vrot.slane %v863_v25, 6  ;;  %v869_v28 = vrot.slane %v863_v25, 7  ;;  %v3598_v29 = vpop.f32.mrb[7].mxu1 }
 0x682   :  { %4032 = vtanh.f32 %v796_v30  ;;  %v3324_v36 = vmul.f32 -1.442695, %v796_v30 }
 0x683   :  { %v872_v31 = vadd.f32 %v868_v27, %v4373_v26  ;;  %v873_v32 = vadd.f32 %v869_v28, %v4371_v23 }
 0x685   :  { %4034 = vtanh.f32 %v872_v31  ;;  %v3325_v37 = vmul.f32 -1.442695, %v872_v31  ;;  %v3326_v38 = vmul.f32 -1.442695, %v873_v32 }
 0x686   :  { %4036 = vtanh.f32 %v873_v32 }
 0x687   :  { %4038 = vpow2.f32 %v3324_v36 }
 0x688   :  { %4040 = vpow2.f32 %v3325_v37 }
 0x689   :  { %4042 = vpow2.f32 %v3326_v38 }
 0x68c   :  { %v4033_v33 = vpop.eup %4032 }
 0x68d   :  { %883 = vrot.lane.b32.xlu1 %v4033_v33, %s4272_s0 }
 0x68f   :  { %v4035_v34 = vpop.eup %4034 }
 0x690   :  { %961 = vrot.lane.b32.xlu0 %v4035_v34, %s4272_s0  ;;  %v4037_v35 = vpop.eup %4036 }
 0x691   :  { %963 = vrot.lane.b32.xlu1 %v4037_v35, %s4272_s0  ;;  %v4039_v39 = vpop.eup %4038 }
 0x692   :  { %v4041_v40 = vpop.eup %4040  ;;  %v877_v41 = vadd.f32 1.0, %v4039_v39 }
 0x693   :  { %v943_v42 = vadd.f32 1.0, %v4041_v40  ;;  %v4043_v43 = vpop.eup %4042 }
 0x694   :  { %4044 = vrcp.f32 %v877_v41  ;;  %v944_v44 = vadd.f32 1.0, %v4043_v43 }
 0x695   :  { %4046 = vrcp.f32 %v943_v42 }
 0x696   :  { %4048 = vrcp.f32 %v944_v44 }
 0x69e   :  { %v4045_v45 = vpop.eup %4044 }
 0x69f   :  { %v4047_v48 = vpop.eup %4046  ;;  %v881_v59 = vmul.f32 %v4045_v45, %v4451_v57 }
 0x6a0   :  { %v4049_v53 = vpop.eup %4048  ;;  %v957_v2 = vmul.f32 %v4047_v48, %v953_v58 }
 0x6a1   :  { %v958_v8 = vmul.f32 %v4049_v53, %v954_v50 }
 0x6ff   :  { %v884_v46 = vpop.permute.xlu1 %883 }
 0x700   :  { %v886_v49 = vmul.f32 %v4045_v45, %v884_v46 }
 0x702   :  { %v962_v51 = vpop.permute.xlu0 %961  ;;  %888 = vrot.lane.b32.xlu0 %v886_v49, %s4271_s22 }
 0x703   :  { %v967_v52 = vmul.f32 %v4047_v48, %v962_v51  ;;  %v964_v55 = vpop.permute.xlu1 %963 }
 0x704   :  { %v968_v56 = vmul.f32 %v4049_v53, %v964_v55 }
 0x705   :  { %971 = vrot.lane.b32.xlu1 %v967_v52, %s4271_s22 }
 0x706   :  { %973 = vrot.lane.b32.xlu0 %v968_v56, %s4271_s22 }
 0x774   :  { %v889_v62 = vpop.permute.xlu0 %888 }
 0x775   :  { %v4501_v5 = vadd.f32 %v889_v62, %v881_v59 }
 0x777   :  { %v972_v47 = vpop.permute.xlu1 %971  ;;  %4050 = vtanh.f32 %v4501_v5 }
 0x778   :  { %v4504_v6 = vadd.f32 %v972_v47, %v957_v2  ;;  %v974_v10 = vpop.permute.xlu0 %973 }
 0x779   :  { %v4508_v11 = vadd.f32 %v974_v10, %v958_v8 }
 0x77a   :  { %4052 = vtanh.f32 %v4504_v6  ;;  %v1301_v8 = vrot.slane %v4504_v6, 7 }
 0x77b   :  { %4054 = vtanh.f32 %v4508_v11 }
 0x781   :  { %v4051_v57 = vpop.eup %4050 }
 0x782   :  { %894 = vrot.lane.b32.xlu1 %v4051_v57, %s4272_s0 }
 0x784   :  { %v4053_v3 = vpop.eup %4052 }
 0x785   :  { %983 = vrot.lane.b32.xlu0 %v4053_v3, %s4272_s0  ;;  %v4055_v12 = vpop.eup %4054 }
 0x786   :  { %985 = vrot.lane.b32.xlu1 %v4055_v12, %s4272_s0 }
 0x7f4   :  { %v895_v4 = vpop.permute.xlu1 %894 }
 0x7f5   :  { %v4514_v13 = vmul.f32 %v4045_v45, %v895_v4 }
 0x7f7   :  { %v984_v16 = vpop.permute.xlu0 %983  ;;  %991 = vrot.lane.b32.xlu0 %v4514_v13, %s4271_s22 }
 0x7f8   :  { %v989_v17 = vmul.f32 %v4047_v48, %v984_v16  ;;  %v986_v18 = vpop.permute.xlu1 %985  ;;  %v1302_v16 = vrot.slane %v4508_v11, 7 }
 0x7f9   :  { %v990_v19 = vmul.f32 %v4049_v53, %v986_v18 }
 0x7fa   :  { %v1067_v20 = vrot.slane %v989_v17, 2 }
 0x7fb   :  { %v1068_v21 = vrot.slane %v990_v19, 1 }
 0x7fd   :  { %v1069_v22 = vsel %vm365_vm2, %v1068_v21, %v1067_v20 }
 0x7fe   :  { %1070 = vrot.lane.b32.xlu1 %v1069_v22, %s4271_s22 }
 0x869   :  { %v992_v24 = vpop.permute.xlu0 %991 }
 0x86a   :  { %3608 = vmatmul.mubr.msk.f32.vlgmr.msra.gmra.mrb[8].mxu0 %vm66_vm1, %v992_v24 }
 0x86b   :  { %3875 = vmatpush3.bf16.msra.mxu0 %v4338_v9  ;;  %3629 = vmatprep.mubr.msk.f32.mxu0 %vm4269_vm0, %v4270_v1 }
 0x86c   :  { %3876 = vmatprep.subr.bf16.mxu0 %v4268_v0 }
 0x86f   :  { %3878 = vmatpush3.bf16.msra.mxu0 %v4348_v15 }
 0x870   :  { %3885 = vmatprep.subr.bf16.mxu0 %v4268_v0  ;;  %v1071_v25 = vpop.permute.xlu1 %1070 }
 0x871   :  { %3619 = vmatmul.mubr.msk.f32.vlgmr.msra.gmra.mrb[8].mxu1 %vm66_vm1, %v1071_v25 }
 0x872   :  { %3630 = vmatmul.mubr.msk.f32.vlgmr.msra.gmra.mrb[10].mxu0 %vm66_vm1, %v1071_v25  ;;  %3881 = vmatpush3.bf16.msra.mxu1 %v4387_v54 }
 0x873   :  { %3640 = vmatprep.mubr.msk.f32.mxu1 %vm4269_vm0, %v4270_v1  ;;  %3882 = vmatprep.subr.bf16.mxu1 %v4268_v0 }
 0x874   :  { %3887 = vmatpush3.bf16.msra.mxu0 %v4392_v61  ;;  %3651 = vmatprep.mubr.msk.f32.mxu0 %vm4269_vm0, %v4270_v1 }
 0x875   :  { %3888 = vmatprep.subr.bf16.mxu0 %v4268_v0 }
 0x876   :  { %3884 = vmatpush3.bf16.msra.mxu1 %v4390_v60 }
 0x877   :  { %3891 = vmatprep.subr.bf16.mxu1 %v4268_v0 }
 0x878   :  { %3890 = vmatpush3.bf16.msra.mxu0 %v4396_v63 }
 0x879   :  { %3897 = vmatprep.subr.bf16.mxu0 %v4268_v0 }
 0x93d   :  { %v1061_v27 = vpop.f32.mrb[8].mxu0 }
 0x93e   :  { %v3609_v28 = vpop.f32.mrb[9].mxu0 }
 0x944   :  { %v1140_v29 = vpop.f32.mrb[8].mxu1 }
 0x945   :  { %v1211_v30 = vpop.f32.mrb[10].mxu0  ;;  %v1141_v31 = vadd.f32 %v1140_v29, %v1061_v27  ;;  %v3620_v33 = vpop.f32.mrb[9].mxu1 }
 0x946   :  { %v1216_v32 = vrot.slane %v1211_v30, 5  ;;  %v3631_v34 = vpop.f32.mrb[11].mxu0  ;;  %v1217_v35 = vrot.slane %v1211_v30, 6 }
 0x947   :  { %v1144_v36 = vadd.f32 %v4434_v14, %v1141_v31 }
 0x948   :  { %v1220_v37 = vadd.f32 %v1216_v32, %v4373_v26  ;;  %v1221_v38 = vadd.f32 %v1217_v35, %v4371_v23 }
 0x949   :  { %4056 = vtanh.f32 %v1144_v36  ;;  %v3330_v42 = vmul.f32 -1.442695, %v1144_v36 }
 0x94a   :  { %4058 = vtanh.f32 %v1220_v37  ;;  %v3331_v43 = vmul.f32 -1.442695, %v1220_v37  ;;  %v3332_v44 = vmul.f32 -1.442695, %v1221_v38 }
 0x94b   :  { %4060 = vtanh.f32 %v1221_v38 }
 0x94c   :  { %4062 = vpow2.f32 %v3330_v42 }
 0x94d   :  { %4064 = vpow2.f32 %v3331_v43 }
 0x94e   :  { %4066 = vpow2.f32 %v3332_v44 }
 0x953   :  { %v4057_v39 = vpop.eup %4056 }
 0x954   :  { %v4059_v40 = vpop.eup %4058  ;;  %1231 = vrot.lane.b32.xlu0 %v4057_v39, %s4272_s0 }
 0x955   :  { %1309 = vrot.lane.b32.xlu1 %v4059_v40, %s4272_s0  ;;  %v4061_v41 = vpop.eup %4060 }
 0x956   :  { %v4063_v45 = vpop.eup %4062 }
 0x957   :  { %v4065_v46 = vpop.eup %4064  ;;  %v1225_v48 = vadd.f32 1.0, %v4063_v45 }
 0x958   :  { %1311 = vrot.lane.b32.xlu0 %v4061_v41, %s4272_s0  ;;  %v1291_v49 = vadd.f32 1.0, %v4065_v46  ;;  %v4067_v51 = vpop.eup %4066 }
 0x959   :  { %4068 = vrcp.f32 %v1225_v48  ;;  %v1292_v52 = vadd.f32 1.0, %v4067_v51 }
 0x95a   :  { %4070 = vrcp.f32 %v1291_v49 }
 0x95b   :  { %4072 = vrcp.f32 %v1292_v52 }
 0x963   :  { %v4069_v53 = vpop.eup %4068 }
 0x964   :  { %v4071_v56 = vpop.eup %4070  ;;  %v1229_v10 = vmul.f32 %v4069_v53, %v4501_v5 }
 0x965   :  { %v4073_v2 = vpop.eup %4072  ;;  %v1305_v57 = vmul.f32 %v4071_v56, %v1301_v8 }
 0x966   :  { %v1306_v18 = vmul.f32 %v4073_v2, %v1302_v16 }
 0x9c6   :  { %v1232_v55 = vpop.permute.xlu0 %1231 }
 0x9c7   :  { %v1310_v58 = vpop.permute.xlu1 %1309  ;;  %v1234_v59 = vmul.f32 %v4069_v53, %v1232_v55 }
 0x9c8   :  { %v1315_v62 = vmul.f32 %v4071_v56, %v1310_v58 }
 0x9c9   :  { %1236 = vrot.lane.b32.xlu1 %v1234_v59, %s4271_s22 }
 0x9ca   :  { %1319 = vrot.lane.b32.xlu0 %v1315_v62, %s4271_s22  ;;  %v1312_v47 = vpop.permute.xlu0 %1311 }
 0x9cb   :  { %v1316_v50 = vmul.f32 %v4073_v2, %v1312_v47 }
 0x9cd   :  { %1321 = vrot.lane.b32.xlu1 %v1316_v50, %s4271_s22 }
 0xa3b   :  { %v1237_v3 = vpop.permute.xlu1 %1236 }
 0xa3c   :  { %v1320_v12 = vpop.permute.xlu0 %1319  ;;  %v4552_v4 = vadd.f32 %v1237_v3, %v1229_v10 }
 0xa3d   :  { %v4555_v17 = vadd.f32 %v1320_v12, %v1305_v57 }
 0xa3e   :  { %4074 = vtanh.f32 %v4552_v4 }
 0xa3f   :  { %4076 = vtanh.f32 %v4555_v17  ;;  %v1322_v19 = vpop.permute.xlu1 %1321 }
 0xa40   :  { %v4559_v20 = vadd.f32 %v1322_v19, %v1306_v18  ;;  %v1649_v19 = vrot.slane %v4555_v17, 7 }
 0xa42   :  { %4078 = vtanh.f32 %v4559_v20 }
 0xa48   :  { %v4075_v5 = vpop.eup %4074 }
 0xa49   :  { %v4077_v6 = vpop.eup %4076  ;;  %1242 = vrot.lane.b32.xlu0 %v4075_v5, %s4272_s0 }
 0xa4a   :  { %1331 = vrot.lane.b32.xlu1 %v4077_v6, %s4272_s0 }
 0xa4c   :  { %v4079_v21 = vpop.eup %4078 }
 0xa4d   :  { %1333 = vrot.lane.b32.xlu0 %v4079_v21, %s4272_s0 }
 0xabb   :  { %v1243_v11 = vpop.permute.xlu0 %1242 }
 0xabc   :  { %v1332_v22 = vpop.permute.xlu1 %1331  ;;  %v4565_v24 = vmul.f32 %v4069_v53, %v1243_v11 }
 0xabd   :  { %v1337_v25 = vmul.f32 %v4071_v56, %v1332_v22 }
 0xabe   :  { %1339 = vrot.lane.b32.xlu1 %v4565_v24, %s4271_s22 }
 0xabf   :  { %v1334_v27 = vpop.permute.xlu0 %1333  ;;  %v1415_v29 = vrot.slane %v1337_v25, 3  ;;  %v1650_v25 = vrot.slane %v4559_v20, 7 }
 0xac0   :  { %v1338_v28 = vmul.f32 %v4073_v2, %v1334_v27 }
 0xac2   :  { %v1416_v30 = vrot.slane %v1338_v28, 2 }
 0xac4   :  { %v1417_v31 = vsel %vm365_vm2, %v1416_v30, %v1415_v29 }
 0xac5   :  { %1418 = vrot.lane.b32.xlu0 %v1417_v31, %s4271_s22 }
 0xb30   :  { %v1340_v32 = vpop.permute.xlu1 %1339 }
 0xb31   :  { %3641 = vmatmul.mubr.msk.f32.vlgmr.msra.gmra.mrb[10].mxu1 %vm66_vm1, %v1340_v32 }
 0xb32   :  { %3893 = vmatpush3.bf16.msra.mxu1 %v4338_v9  ;;  %3662 = vmatprep.mubr.msk.f32.mxu1 %vm4269_vm0, %v4270_v1 }
 0xb33   :  { %3894 = vmatprep.subr.bf16.mxu1 %v4268_v0 }
 0xb36   :  { %3896 = vmatpush3.bf16.msra.mxu1 %v4348_v15 }
 0xb37   :  { %3903 = vmatprep.subr.bf16.mxu1 %v4268_v0  ;;  %v1419_v33 = vpop.permute.xlu0 %1418 }
 0xb38   :  { %3652 = vmatmul.mubr.msk.f32.vlgmr.msra.gmra.mrb[12].mxu0 %vm66_vm1, %v1419_v33 }
 0xb39   :  { %3663 = vmatmul.mubr.msk.f32.vlgmr.msra.gmra.mrb[12].mxu1 %vm66_vm1, %v1419_v33  ;;  %3899 = vmatpush3.bf16.msra.mxu0 %v4387_v54 }
 0xb3a   :  { %3673 = vmatprep.mubr.msk.f32.mxu0 %vm4269_vm0, %v4270_v1  ;;  %3900 = vmatprep.subr.bf16.mxu0 %v4268_v0 }
 0xb3b   :  { %3905 = vmatpush3.bf16.msra.mxu1 %v4392_v61  ;;  %3684 = vmatprep.mubr.msk.f32.mxu1 %vm4269_vm0, %v4270_v1 }
 0xb3c   :  { %3906 = vmatprep.subr.bf16.mxu1 %v4268_v0 }
 0xb3d   :  { %3902 = vmatpush3.bf16.msra.mxu0 %v4390_v60 }
 0xb3e   :  { %3909 = vmatprep.subr.bf16.mxu0 %v4268_v0 }
 0xb3f   :  { %3908 = vmatpush3.bf16.msra.mxu1 %v4396_v63 }
 0xb40   :  { %3915 = vmatprep.subr.bf16.mxu1 %v4268_v0 }
 0xc04   :  { %v1409_v34 = vpop.f32.mrb[10].mxu1 }
 0xc05   :  { %v3642_v35 = vpop.f32.mrb[11].mxu1 }
 0xc0b   :  { %v1488_v36 = vpop.f32.mrb[12].mxu0 }
 0xc0c   :  { %v1559_v37 = vpop.f32.mrb[12].mxu1  ;;  %v1489_v38 = vadd.f32 %v1488_v36, %v1409_v34  ;;  %v3653_v40 = vpop.f32.mrb[13].mxu0 }
 0xc0d   :  { %v1564_v39 = vrot.slane %v1559_v37, 4  ;;  %v3664_v41 = vpop.f32.mrb[13].mxu1  ;;  %v1565_v42 = vrot.slane %v1559_v37, 5 }
 0xc0e   :  { %v1492_v43 = vadd.f32 %v4434_v14, %v1489_v38 }
 0xc0f   :  { %v1568_v44 = vadd.f32 %v1564_v39, %v4373_v26  ;;  %v1569_v45 = vadd.f32 %v1565_v42, %v4371_v23 }
 0xc10   :  { %4080 = vtanh.f32 %v1492_v43  ;;  %v3336_v51 = vmul.f32 -1.442695, %v1492_v43 }
 0xc11   :  { %4082 = vtanh.f32 %v1568_v44  ;;  %v3337_v52 = vmul.f32 -1.442695, %v1568_v44  ;;  %v3338_v53 = vmul.f32 -1.442695, %v1569_v45 }
 0xc12   :  { %4084 = vtanh.f32 %v1569_v45 }
 0xc13   :  { %4086 = vpow2.f32 %v3336_v51 }
 0xc14   :  { %4088 = vpow2.f32 %v3337_v52 }
 0xc15   :  { %4090 = vpow2.f32 %v3338_v53 }
 0xc1a   :  { %v4081_v46 = vpop.eup %4080 }
 0xc1b   :  { %v4083_v48 = vpop.eup %4082  ;;  %1579 = vrot.lane.b32.xlu1 %v4081_v46, %s4272_s0 }
 0xc1c   :  { %1657 = vrot.lane.b32.xlu0 %v4083_v48, %s4272_s0  ;;  %v4085_v49 = vpop.eup %4084 }
 0xc1d   :  { %v4087_v55 = vpop.eup %4086 }
 0xc1e   :  { %v4089_v56 = vpop.eup %4088  ;;  %v1573_v58 = vadd.f32 1.0, %v4087_v55 }
 0xc1f   :  { %1659 = vrot.lane.b32.xlu1 %v4085_v49, %s4272_s0  ;;  %v1639_v59 = vadd.f32 1.0, %v4089_v56  ;;  %v4091_v62 = vpop.eup %4090 }
 0xc20   :  { %4092 = vrcp.f32 %v1573_v58  ;;  %v1640_v2 = vadd.f32 1.0, %v4091_v62 }
 0xc21   :  { %4094 = vrcp.f32 %v1639_v59 }
 0xc22   :  { %4096 = vrcp.f32 %v1640_v2 }
 0xc2a   :  { %v4093_v47 = vpop.eup %4092 }
 0xc2b   :  { %v4095_v8 = vpop.eup %4094  ;;  %v1577_v5 = vmul.f32 %v4093_v47, %v4552_v4 }
 0xc2c   :  { %v4097_v12 = vpop.eup %4096  ;;  %v1653_v21 = vmul.f32 %v4095_v8, %v1649_v19 }
 0xc2d   :  { %v1654_v28 = vmul.f32 %v4097_v12, %v1650_v25 }
 0xc8d   :  { %v1580_v50 = vpop.permute.xlu1 %1579 }
 0xc8e   :  { %v1582_v10 = vmul.f32 %v4093_v47, %v1580_v50  ;;  %v1658_v57 = vpop.permute.xlu0 %1657 }
 0xc8f   :  { %v1663_v3 = vmul.f32 %v4095_v8, %v1658_v57 }
 0xc90   :  { %1584 = vrot.lane.b32.xlu0 %v1582_v10, %s4271_s22 }
 0xc91   :  { %1667 = vrot.lane.b32.xlu1 %v1663_v3, %s4271_s22  ;;  %v1660_v16 = vpop.permute.xlu1 %1659 }
 0xc92   :  { %v1664_v18 = vmul.f32 %v4097_v12, %v1660_v16 }
 0xc94   :  { %1669 = vrot.lane.b32.xlu0 %v1664_v18, %s4271_s22 }
 0xd02   :  { %v1585_v6 = vpop.permute.xlu0 %1584 }
 0xd03   :  { %v4603_v11 = vadd.f32 %v1585_v6, %v1577_v5  ;;  %v1668_v22 = vpop.permute.xlu1 %1667 }
 0xd04   :  { %v4606_v27 = vadd.f32 %v1668_v22, %v1653_v21 }
 0xd05   :  { %4098 = vtanh.f32 %v4603_v11 }
 0xd06   :  { %4100 = vtanh.f32 %v4606_v27  ;;  %v1670_v29 = vpop.permute.xlu0 %1669 }
 0xd07   :  { %v4610_v30 = vadd.f32 %v1670_v29, %v1654_v28 }
 0xd09   :  { %4102 = vtanh.f32 %v4610_v30 }
 0xd0f   :  { %v4099_v4 = vpop.eup %4098 }
 0xd10   :  { %v4101_v17 = vpop.eup %4100  ;;  %1590 = vrot.lane.b32.xlu1 %v4099_v4, %s4272_s0  ;;  %v1997_v4 = vrot.slane %v4606_v27, 7 }
 0xd11   :  { %1679 = vrot.lane.b32.xlu0 %v4101_v17, %s4272_s0 }
 0xd13   :  { %v4103_v31 = vpop.eup %4102 }
 0xd14   :  { %1681 = vrot.lane.b32.xlu1 %v4103_v31, %s4272_s0 }
 0xd82   :  { %v1591_v20 = vpop.permute.xlu1 %1590 }
 0xd83   :  { %v4616_v32 = vmul.f32 %v4093_v47, %v1591_v20  ;;  %v1680_v33 = vpop.permute.xlu0 %1679 }
 0xd84   :  { %v1685_v34 = vmul.f32 %v4095_v8, %v1680_v33 }
 0xd85   :  { %1687 = vrot.lane.b32.xlu0 %v4616_v32, %s4271_s22 }
 0xd86   :  { %v1682_v35 = vpop.permute.xlu1 %1681  ;;  %v1763_v37 = vrot.slane %v1685_v34, 4 }
 0xd87   :  { %v1686_v36 = vmul.f32 %v4097_v12, %v1682_v35  ;;  %v1998_v35 = vrot.slane %v4610_v30, 7 }
 0xd89   :  { %v1764_v38 = vrot.slane %v1686_v36, 3 }
 0xd8b   :  { %v1765_v39 = vsel %vm365_vm2, %v1764_v38, %v1763_v37 }
 0xd8c   :  { %1766 = vrot.lane.b32.xlu1 %v1765_v39, %s4271_s22 }
 0xdf7   :  { %v1688_v40 = vpop.permute.xlu0 %1687 }
 0xdf8   :  { %3674 = vmatmul.mubr.msk.f32.vlgmr.msra.gmra.mrb[14].mxu0 %vm66_vm1, %v1688_v40 }
 0xdf9   :  { %3911 = vmatpush3.bf16.msra.mxu0 %v4338_v9  ;;  %3695 = vmatprep.mubr.msk.f32.mxu0 %vm4269_vm0, %v4270_v1 }
 0xdfa   :  { %3912 = vmatprep.subr.bf16.mxu0 %v4268_v0 }
 0xdfd   :  { %3914 = vmatpush3.bf16.msra.mxu0 %v4348_v15 }
 0xdfe   :  { %3921 = vmatprep.subr.bf16.mxu0 %v4268_v0  ;;  %v1767_v41 = vpop.permute.xlu1 %1766 }
 0xdff   :  { %3685 = vmatmul.mubr.msk.f32.vlgmr.msra.gmra.mrb[14].mxu1 %vm66_vm1, %v1767_v41 }
 0xe00   :  { %3696 = vmatmul.mubr.msk.f32.vlgmr.msra.gmra.mrb[16].mxu0 %vm66_vm1, %v1767_v41  ;;  %3917 = vmatpush3.bf16.msra.mxu1 %v4387_v54 }
 0xe01   :  { %3706 = vmatprep.mubr.msk.f32.mxu1 %vm4269_vm0, %v4270_v1  ;;  %3918 = vmatprep.subr.bf16.mxu1 %v4268_v0 }
 0xe02   :  { %3923 = vmatpush3.bf16.msra.mxu0 %v4392_v61  ;;  %3717 = vmatprep.mubr.msk.f32.mxu0 %vm4269_vm0, %v4270_v1 }
 0xe03   :  { %3924 = vmatprep.subr.bf16.mxu0 %v4268_v0 }
 0xe04   :  { %3920 = vmatpush3.bf16.msra.mxu1 %v4390_v60 }
 0xe05   :  { %3927 = vmatprep.subr.bf16.mxu1 %v4268_v0 }
 0xe06   :  { %3926 = vmatpush3.bf16.msra.mxu0 %v4396_v63 }
 0xe07   :  { %3933 = vmatprep.subr.bf16.mxu0 %v4268_v0 }
 0xecb   :  { %v1757_v42 = vpop.f32.mrb[14].mxu0 }
 0xecc   :  { %v3675_v43 = vpop.f32.mrb[15].mxu0 }
 0xed2   :  { %v1836_v44 = vpop.f32.mrb[14].mxu1 }
 0xed3   :  { %v1907_v45 = vpop.f32.mrb[16].mxu0  ;;  %v1837_v46 = vadd.f32 %v1836_v44, %v1757_v42  ;;  %v3686_v49 = vpop.f32.mrb[15].mxu1 }
 0xed4   :  { %v1912_v48 = vrot.slane %v1907_v45, 3  ;;  %v3697_v51 = vpop.f32.mrb[17].mxu0  ;;  %v1913_v52 = vrot.slane %v1907_v45, 4 }
 0xed5   :  { %v1840_v53 = vadd.f32 %v4434_v14, %v1837_v46 }
 0xed6   :  { %v1916_v55 = vadd.f32 %v1912_v48, %v4373_v26  ;;  %v1917_v56 = vadd.f32 %v1913_v52, %v4371_v23 }
 0xed7   :  { %4104 = vtanh.f32 %v1840_v53  ;;  %v3342_v2 = vmul.f32 -1.442695, %v1840_v53 }
 0xed8   :  { %4106 = vtanh.f32 %v1916_v55  ;;  %v3343_v47 = vmul.f32 -1.442695, %v1916_v55  ;;  %v3344_v50 = vmul.f32 -1.442695, %v1917_v56 }
 0xed9   :  { %4108 = vtanh.f32 %v1917_v56 }
 0xeda   :  { %4110 = vpow2.f32 %v3342_v2 }
 0xedb   :  { %4112 = vpow2.f32 %v3343_v47 }
 0xedc   :  { %4114 = vpow2.f32 %v3344_v50 }
 0xee1   :  { %v4105_v58 = vpop.eup %4104 }
 0xee2   :  { %v4107_v59 = vpop.eup %4106  ;;  %1927 = vrot.lane.b32.xlu0 %v4105_v58, %s4272_s0 }
 0xee3   :  { %2005 = vrot.lane.b32.xlu1 %v4107_v59, %s4272_s0  ;;  %v4109_v62 = vpop.eup %4108 }
 0xee4   :  { %v4111_v8 = vpop.eup %4110 }
 0xee5   :  { %v4113_v10 = vpop.eup %4112  ;;  %v1921_v57 = vadd.f32 1.0, %v4111_v8 }
 0xee6   :  { %2007 = vrot.lane.b32.xlu0 %v4109_v62, %s4272_s0  ;;  %v1987_v3 = vadd.f32 1.0, %v4113_v10  ;;  %v4115_v12 = vpop.eup %4114 }
 0xee7   :  { %4116 = vrcp.f32 %v1921_v57  ;;  %v1988_v16 = vadd.f32 1.0, %v4115_v12 }
 0xee8   :  { %4118 = vrcp.f32 %v1987_v3 }
 0xee9   :  { %4120 = vrcp.f32 %v1988_v16 }
 0xef1   :  { %v4117_v18 = vpop.eup %4116 }
 0xef2   :  { %v4119_v5 = vpop.eup %4118  ;;  %v1925_v17 = vmul.f32 %v4117_v18, %v4603_v11 }
 0xef3   :  { %v4121_v25 = vpop.eup %4120  ;;  %v2001_v31 = vmul.f32 %v4119_v5, %v1997_v4 }
 0xef4   :  { %v2002_v37 = vmul.f32 %v4121_v25, %v1998_v35 }
 0xf54   :  { %v1928_v19 = vpop.permute.xlu0 %1927 }
 0xf55   :  { %v2006_v6 = vpop.permute.xlu1 %2005  ;;  %v1930_v21 = vmul.f32 %v4117_v18, %v1928_v19 }
 0xf56   :  { %v2011_v22 = vmul.f32 %v4119_v5, %v2006_v6 }
 0xf57   :  { %1932 = vrot.lane.b32.xlu1 %v1930_v21, %s4271_s22 }
 0xf58   :  { %2015 = vrot.lane.b32.xlu0 %v2011_v22, %s4271_s22  ;;  %v2008_v28 = vpop.permute.xlu0 %2007 }
 0xf59   :  { %v2012_v29 = vmul.f32 %v4121_v25, %v2008_v28 }
 0xf5b   :  { %2017 = vrot.lane.b32.xlu1 %v2012_v29, %s4271_s22 }
 0xfc9   :  { %v1933_v20 = vpop.permute.xlu1 %1932 }
 0xfca   :  { %v2016_v33 = vpop.permute.xlu0 %2015  ;;  %v4654_v34 = vadd.f32 %v1933_v20, %v1925_v17 }
 0xfcb   :  { %v4657_v36 = vadd.f32 %v2016_v33, %v2001_v31 }
 0xfcc   :  { %4122 = vtanh.f32 %v4654_v34 }
 0xfcd   :  { %4124 = vtanh.f32 %v4657_v36  ;;  %v2018_v38 = vpop.permute.xlu1 %2017 }
 0xfce   :  { %v4661_v39 = vadd.f32 %v2018_v38, %v2002_v37 }
 0xfd0   :  { %4126 = vtanh.f32 %v4661_v39 }
 0xfd6   :  { %v4123_v11 = vpop.eup %4122 }
 0xfd7   :  { %v4125_v27 = vpop.eup %4124  ;;  %1938 = vrot.lane.b32.xlu0 %v4123_v11, %s4272_s0  ;;  %v2345_v11 = vrot.slane %v4657_v36, 7 }
 0xfd8   :  { %2027 = vrot.lane.b32.xlu1 %v4125_v27, %s4272_s0 }
 0xfda   :  { %v4127_v40 = vpop.eup %4126 }
 0xfdb   :  { %2029 = vrot.lane.b32.xlu0 %v4127_v40, %s4272_s0 }
0x1049   :  { %v1939_v30 = vpop.permute.xlu0 %1938 }
0x104a   :  { %v2028_v41 = vpop.permute.xlu1 %2027  ;;  %v4667_v42 = vmul.f32 %v4117_v18, %v1939_v30 }
0x104b   :  { %v2033_v43 = vmul.f32 %v4119_v5, %v2028_v41 }
0x104c   :  { %2035 = vrot.lane.b32.xlu1 %v4667_v42, %s4271_s22 }
0x104d   :  { %v2030_v44 = vpop.permute.xlu0 %2029  ;;  %v2111_v46 = vrot.slane %v2033_v43, 5 }
0x104e   :  { %v2034_v45 = vmul.f32 %v4121_v25, %v2030_v44  ;;  %v2346_v44 = vrot.slane %v4661_v39, 7 }
0x1050   :  { %v2112_v48 = vrot.slane %v2034_v45, 4 }
0x1052   :  { %v2113_v49 = vsel %vm365_vm2, %v2112_v48, %v2111_v46 }
0x1053   :  { %2114 = vrot.lane.b32.xlu0 %v2113_v49, %s4271_s22 }
0x10be   :  { %v2036_v51 = vpop.permute.xlu1 %2035 }
0x10bf   :  { %3707 = vmatmul.mubr.msk.f32.vlgmr.msra.gmra.mrb[16].mxu1 %vm66_vm1, %v2036_v51 }
0x10c0   :  { %3929 = vmatpush3.bf16.msra.mxu1 %v4338_v9  ;;  %3728 = vmatprep.mubr.msk.f32.mxu1 %vm4269_vm0, %v4270_v1 }
0x10c1   :  { %3930 = vmatprep.subr.bf16.mxu1 %v4268_v0 }
0x10c4   :  { %3932 = vmatpush3.bf16.msra.mxu1 %v4348_v15 }
0x10c5   :  { %3939 = vmatprep.subr.bf16.mxu1 %v4268_v0  ;;  %v2115_v52 = vpop.permute.xlu0 %2114 }
0x10c6   :  { %3718 = vmatmul.mubr.msk.f32.vlgmr.msra.gmra.mrb[18].mxu0 %vm66_vm1, %v2115_v52 }
0x10c7   :  { %3729 = vmatmul.mubr.msk.f32.vlgmr.msra.gmra.mrb[18].mxu1 %vm66_vm1, %v2115_v52  ;;  %3935 = vmatpush3.bf16.msra.mxu0 %v4387_v54 }
0x10c8   :  { %3739 = vmatprep.mubr.msk.f32.mxu0 %vm4269_vm0, %v4270_v1  ;;  %3936 = vmatprep.subr.bf16.mxu0 %v4268_v0 }
0x10c9   :  { %3941 = vmatpush3.bf16.msra.mxu1 %v4392_v61  ;;  %3750 = vmatprep.mubr.msk.f32.mxu1 %vm4269_vm0, %v4270_v1 }
0x10ca   :  { %3942 = vmatprep.subr.bf16.mxu1 %v4268_v0 }
0x10cb   :  { %3938 = vmatpush3.bf16.msra.mxu0 %v4390_v60 }
0x10cc   :  { %3945 = vmatprep.subr.bf16.mxu0 %v4268_v0 }
0x10cd   :  { %3944 = vmatpush3.bf16.msra.mxu1 %v4396_v63 }
0x10ce   :  { %3951 = vmatprep.subr.bf16.mxu1 %v4268_v0 }
0x1192   :  { %v2105_v53 = vpop.f32.mrb[16].mxu1 }
0x1193   :  { %v3708_v55 = vpop.f32.mrb[17].mxu1 }
0x1199   :  { %v2184_v56 = vpop.f32.mrb[18].mxu0 }
0x119a   :  { %v2255_v58 = vpop.f32.mrb[18].mxu1  ;;  %v2185_v59 = vadd.f32 %v2184_v56, %v2105_v53  ;;  %v3719_v2 = vpop.f32.mrb[19].mxu0 }
0x119b   :  { %v2260_v62 = vrot.slane %v2255_v58, 2  ;;  %v3730_v47 = vpop.f32.mrb[19].mxu1  ;;  %v2261_v50 = vrot.slane %v2255_v58, 3 }
0x119c   :  { %v2188_v8 = vadd.f32 %v4434_v14, %v2185_v59 }
0x119d   :  { %v2264_v10 = vadd.f32 %v2260_v62, %v4373_v26  ;;  %v2265_v57 = vadd.f32 %v2261_v50, %v4371_v23 }
0x119e   :  { %4128 = vtanh.f32 %v2188_v8  ;;  %v3348_v18 = vmul.f32 -1.442695, %v2188_v8 }
0x119f   :  { %4130 = vtanh.f32 %v2264_v10  ;;  %v3349_v19 = vmul.f32 -1.442695, %v2264_v10  ;;  %v3350_v14 = vmul.f32 -1.442695, %v2265_v57 }
0x11a0   :  { %4132 = vtanh.f32 %v2265_v57 }
0x11a1   :  { %4134 = vpow2.f32 %v3348_v18 }
0x11a2   :  { %4136 = vpow2.f32 %v3349_v19 }
0x11a3   :  { %4138 = vpow2.f32 %v3350_v14 }
0x11a8   :  { %v4129_v3 = vpop.eup %4128 }
0x11a9   :  { %v4131_v12 = vpop.eup %4130  ;;  %2275 = vrot.lane.b32.xlu1 %v4129_v3, %s4272_s0 }
0x11aa   :  { %2353 = vrot.lane.b32.xlu0 %v4131_v12, %s4272_s0  ;;  %v4133_v16 = vpop.eup %4132 }
0x11ab   :  { %v4135_v5 = vpop.eup %4134 }
0x11ac   :  { %v4137_v6 = vpop.eup %4136  ;;  %v2269_v21 = vadd.f32 1.0, %v4135_v5 }
0x11ad   :  { %2355 = vrot.lane.b32.xlu1 %v4133_v16, %s4272_s0  ;;  %v2335_v22 = vadd.f32 1.0, %v4137_v6  ;;  %v4139_v25 = vpop.eup %4138  ;;  %v4747_v16 = vld [vmem:[%s4970_s4 + $0x1] ss:$0 sm:$0xff]  ;;  %s4274_s4 = smov 96  }
0x11ae   :  { %4140 = vrcp.f32 %v2269_v21  ;;  %v2336_v28 = vadd.f32 1.0, %v4139_v25 }
0x11af   :  { %4142 = vrcp.f32 %v2335_v22 }
0x11b0   :  { %4144 = vrcp.f32 %v2336_v28 }
0x11b8   :  { %v4141_v29 = vpop.eup %4140 }
0x11b9   :  { %v4143_v17 = vpop.eup %4142  ;;  %v2273_v27 = vmul.f32 %v4141_v29, %v4654_v34 }
0x11ba   :  { %v4145_v35 = vpop.eup %4144  ;;  %v2349_v30 = vmul.f32 %v4143_v17, %v2345_v11 }
0x11bb   :  { %v2350_v46 = vmul.f32 %v4145_v35, %v2346_v44 }
0x121b   :  { %v2276_v4 = vpop.permute.xlu1 %2275 }
0x121c   :  { %v2278_v31 = vmul.f32 %v4141_v29, %v2276_v4  ;;  %v2354_v20 = vpop.permute.xlu0 %2353 }
0x121d   :  { %v2359_v33 = vmul.f32 %v4143_v17, %v2354_v20 }
0x121e   :  { %2280 = vrot.lane.b32.xlu0 %v2278_v31, %s4271_s22 }
0x121f   :  { %2363 = vrot.lane.b32.xlu1 %v2359_v33, %s4271_s22  ;;  %v2356_v37 = vpop.permute.xlu1 %2355 }
0x1220   :  { %v2360_v38 = vmul.f32 %v4145_v35, %v2356_v37 }
0x1222   :  { %2365 = vrot.lane.b32.xlu0 %v2360_v38, %s4271_s22 }
0x1290   :  { %v2281_v40 = vpop.permute.xlu0 %2280 }
0x1291   :  { %v4705_v41 = vadd.f32 %v2281_v40, %v2273_v27  ;;  %v2364_v43 = vpop.permute.xlu1 %2363 }
0x1292   :  { %v4708_v45 = vadd.f32 %v2364_v43, %v2349_v30 }
0x1293   :  { %4146 = vtanh.f32 %v4705_v41 }
0x1294   :  { %4148 = vtanh.f32 %v4708_v45  ;;  %v2366_v48 = vpop.permute.xlu0 %2365  ;;  %v2693_v11 = vrot.slane %v4708_v45, 7 }
0x1295   :  { %v4712_v49 = vadd.f32 %v2366_v48, %v2350_v46 }
0x1297   :  { %4150 = vtanh.f32 %v4712_v49  ;;  %v2694_v30 = vrot.slane %v4712_v49, 7 }
0x129d   :  { %v4147_v34 = vpop.eup %4146 }
0x129e   :  { %v4149_v36 = vpop.eup %4148  ;;  %2286 = vrot.lane.b32.xlu1 %v4147_v34, %s4272_s0 }
0x129f   :  { %2375 = vrot.lane.b32.xlu0 %v4149_v36, %s4272_s0 }
0x12a1   :  { %v4151_v51 = vpop.eup %4150 }
0x12a2   :  { %2377 = vrot.lane.b32.xlu1 %v4151_v51, %s4272_s0 }
0x1310   :  { %v2287_v39 = vpop.permute.xlu1 %2286 }
0x1311   :  { %v4718_v52 = vmul.f32 %v4141_v29, %v2287_v39  ;;  %v2376_v53 = vpop.permute.xlu0 %2375 }
0x1312   :  { %v2381_v55 = vmul.f32 %v4143_v17, %v2376_v53 }
0x1313   :  { %2383 = vrot.lane.b32.xlu0 %v4718_v52, %s4271_s22 }
0x1314   :  { %v2378_v56 = vpop.permute.xlu1 %2377  ;;  %v2459_v59 = vrot.slane %v2381_v55, 6 }
0x1315   :  { %v2382_v58 = vmul.f32 %v4145_v35, %v2378_v56 }
0x1317   :  { %v2460_v62 = vrot.slane %v2382_v58, 5 }
0x1319   :  { %v2461_v2 = vsel %vm365_vm2, %v2460_v62, %v2459_v59 }
0x131a   :  { %2462 = vrot.lane.b32.xlu1 %v2461_v2, %s4271_s22 }
0x1385   :  { %v2384_v47 = vpop.permute.xlu0 %2383 }
0x1386   :  { %3740 = vmatmul.mubr.msk.f32.vlgmr.msra.gmra.mrb[20].mxu0 %vm66_vm1, %v2384_v47 }
0x1387   :  { %3947 = vmatpush3.bf16.msra.mxu0 %v4338_v9  ;;  %3761 = vmatprep.mubr.msk.f32.mxu0 %vm4269_vm0, %v4270_v1 }
0x1388   :  { %3948 = vmatprep.subr.bf16.mxu0 %v4268_v0 }
0x138b   :  { %3950 = vmatpush3.bf16.msra.mxu0 %v4348_v15 }
0x138c   :  { %3957 = vmatprep.subr.bf16.mxu0 %v4268_v0  ;;  %v2463_v50 = vpop.permute.xlu1 %2462 }
0x138d   :  { %3751 = vmatmul.mubr.msk.f32.vlgmr.msra.gmra.mrb[20].mxu1 %vm66_vm1, %v2463_v50 }
0x138e   :  { %3762 = vmatmul.mubr.msk.f32.vlgmr.msra.gmra.mrb[22].mxu0 %vm66_vm1, %v2463_v50  ;;  %3953 = vmatpush3.bf16.msra.mxu1 %v4387_v54 }
0x138f   :  { %3959 = vmatpush3.bf16.msra.mxu0 %v4392_v61  ;;  %3954 = vmatprep.subr.bf16.mxu1 %v4268_v0 }
0x1390   :  { %3960 = vmatprep.subr.bf16.mxu0 %v4268_v0  ;;  %3783 = vmatprep.mubr.msk.f32.mxu0 %vm4269_vm0, %v4270_v1 }
0x1391   :  { %3772 = vmatprep.mubr.msk.f32.mxu1 %vm4269_vm0, %v4270_v1 }
0x1392   :  { %3956 = vmatpush3.bf16.msra.mxu1 %v4390_v60 }
0x1393   :  { %3962 = vmatpush3.bf16.msra.mxu0 %v4396_v63 }
0x1459   :  { %v2453_v9 = vpop.f32.mrb[20].mxu0 }
0x145a   :  { %v3741_v15 = vpop.f32.mrb[21].mxu0 }
0x1460   :  { %v2532_v8 = vpop.f32.mrb[20].mxu1 }
0x1461   :  { %v2603_v61 = vpop.f32.mrb[22].mxu0  ;;  %v2533_v10 = vadd.f32 %v2532_v8, %v2453_v9  ;;  %v3752_v57 = vpop.f32.mrb[21].mxu1 }
0x1462   :  { %v2608_v54 = vrot.slane %v2603_v61, 1  ;;  %v3763_v3 = vpop.f32.mrb[23].mxu0  ;;  %v2609_v12 = vrot.slane %v2603_v61, 2 }
0x1463   :  { %v2536_v1 = vadd.f32 %v4747_v16, %v2533_v10 }
0x1464   :  { %v2612_v0 = vadd.f32 %v2608_v54, %v4373_v26  ;;  %v2613_v60 = vadd.f32 %v2609_v12, %v4371_v23 }
0x1465   :  { %v3354_v14 = vmul.f32 -1.442695, %v2536_v1 }
0x1466   :  { %4152 = vtanh.f32 %v2612_v0  ;;  %v3355_v26 = vmul.f32 -1.442695, %v2612_v0  ;;  %v3356_v5 = vmul.f32 -1.442695, %v2613_v60 }
0x1467   :  { %4154 = vtanh.f32 %v2536_v1  ;;  %v4273_v1 = vmov 1966171168  }
0x1468   :  { %4156 = vtanh.f32 %v2613_v60  ;;  %v552_v60 = vunpack.c.l.s4 %v4273_v1 }
0x1469   :  { %4158 = vpow2.f32 %v3355_v26 }
0x146a   :  { %4160 = vpow2.f32 %v3354_v14 }
0x146b   :  { %4162 = vpow2.f32 %v3356_v5 }
0x1470   :  { %v4153_v63 = vpop.eup %4152 }
0x1471   :  { %2701 = vrot.lane.b32.xlu0 %v4153_v63, %s4272_s0  ;;  %v4155_v18 = vpop.eup %4154  ;;  %v554_v63 = vlaneseq }
0x1472   :  { %v4157_v19 = vpop.eup %4156 }
0x1473   :  { %2703 = vrot.lane.b32.xlu1 %v4157_v19, %s4272_s0  ;;  %v4159_v6 = vpop.eup %4158  ;;  %v553_v19 = vunpack.c.0.s8 %v552_v60  ;;  %v555_v26 = vshrl.u32 %v554_v63, 7 }
0x1474   :  { %v4161_v23 = vpop.eup %4160  ;;  %v2683_v21 = vadd.f32 1.0, %v4159_v6 }
0x1475   :  { %2623 = vrot.lane.b32.xlu0 %v4155_v18, %s4272_s0  ;;  %v4163_v22 = vpop.eup %4162  ;;  %v2617_v25 = vadd.f32 1.0, %v4161_v23  ;;  %v4785_v14 = vsub.s32 %v553_v19, %v555_v26 }
0x1476   :  { %v2684_v28 = vadd.f32 1.0, %v4163_v22  ;;  %4164 = vrcp.f32 %v2683_v21 }
0x1477   :  { %4166 = vrcp.f32 %v2617_v25  ;;  %v557_v5 = vrot.slane %v4463_v7, %v4785_v14  ;;  %v1253_v21 = vrot.slane %v4565_v24, %v4785_v14  ;;  %v4795_v25 = vsub.s32 0, %v555_v26  ;;  %v2981_v26 = vld [vmem:[%s4971_s5] sm:$0xff] }
0x1478   :  { %4168 = vrcp.f32 %v2684_v28 }
0x1479   :  { %v565_v23 = vrot.slane %v557_v5, %v4785_v14  ;;  %v1261_v28 = vrot.slane %v1253_v21, %v4785_v14 }
0x147b   :  { %v576_v7 = vrot.slane %v565_v23, %v4795_v25  ;;  %v1272_v24 = vrot.slane %v1261_v28, %v4795_v25  ;;  %v2984_v28 = vld [vmem:[%s4971_s5 + $0x18] sm:$0xff] }
0x1480   :  { %v4165_v29 = vpop.eup %4164 }
0x1481   :  { %v4167_v31 = vpop.eup %4166  ;;  %v2697_v27 = vmul.f32 %v4165_v29, %v2693_v11 }
0x1482   :  { %v4169_v20 = vpop.eup %4168  ;;  %v2621_v46 = vmul.f32 %v4167_v31, %v4705_v41 }
0x1483   :  { %v2698_v44 = vmul.f32 %v4169_v20, %v2694_v30 }
0x14e3   :  { %v2702_v4 = vpop.permute.xlu0 %2701 }
0x14e4   :  { %v2707_v17 = vmul.f32 %v4165_v29, %v2702_v4 }
0x14e5   :  { %v2704_v33 = vpop.permute.xlu1 %2703 }
0x14e6   :  { %2711 = vrot.lane.b32.xlu1 %v2707_v17, %s4271_s22  ;;  %v2708_v37 = vmul.f32 %v4169_v20, %v2704_v33 }
0x14e7   :  { %v2624_v35 = vpop.permute.xlu0 %2623 }
0x14e8   :  { %v2626_v38 = vmul.f32 %v4167_v31, %v2624_v35  ;;  %2713 = vrot.lane.b32.xlu0 %v2708_v37, %s4271_s22  ;;  %v1254_v35 = vcombine.high %v1253_v21, %v1253_v21 }
0x14ea   :  { %2628 = vrot.lane.b32.xlu1 %v2626_v38, %s4271_s22  ;;  %v1268_v38 = vrot.slane %v1254_v35, %v4785_v14 }
0x1558   :  { %v2712_v40 = vpop.permute.xlu1 %2711 }
0x1559   :  { %v4759_v43 = vadd.f32 %v2712_v40, %v2697_v27 }
0x155a   :  { %v2714_v48 = vpop.permute.xlu0 %2713 }
0x155b   :  { %4170 = vtanh.f32 %v4759_v43  ;;  %v4763_v36 = vadd.f32 %v2714_v48, %v2698_v44  ;;  %v1276_v44 = vrot.slane %v1268_v38, %v4795_v25 }
0x155c   :  { %v2629_v34 = vpop.permute.xlu1 %2628 }
0x155d   :  { %v4765_v51 = vadd.f32 %v2629_v34, %v2621_v46  ;;  %4172 = vtanh.f32 %v4763_v36 }
0x155f   :  { %4174 = vtanh.f32 %v4765_v51 }
0x1565   :  { %v4171_v45 = vpop.eup %4170 }
0x1566   :  { %2723 = vrot.lane.b32.xlu0 %v4171_v45, %s4272_s0 }
0x1567   :  { %v4173_v49 = vpop.eup %4172 }
0x1568   :  { %2725 = vrot.lane.b32.xlu1 %v4173_v49, %s4272_s0 }
0x1569   :  { %v4175_v39 = vpop.eup %4174 }
0x156a   :  { %2634 = vrot.lane.b32.xlu0 %v4175_v39, %s4272_s0 }
0x15d8   :  { %v2724_v41 = vpop.permute.xlu0 %2723 }
0x15d9   :  { %v4772_v53 = vmul.f32 %v4165_v29, %v2724_v41  ;;  %v1949_v29 = vrot.slane %v4667_v42, %v4785_v14 }
0x15da   :  { %v2726_v55 = vpop.permute.xlu1 %2725 }
0x15db   :  { %v2807_v56 = vrot.slane %v4772_v53, 7  ;;  %v4775_v58 = vmul.f32 %v4169_v20, %v2726_v55  ;;  %v1957_v4 = vrot.slane %v1949_v29, %v4785_v14  ;;  %v1950_v11 = vcombine.high %v1949_v29, %v1949_v29 }
0x15dc   :  { %v2635_v59 = vpop.permute.xlu0 %2634  ;;  %v905_v55 = vrot.slane %v4514_v13, %v4785_v14 }
0x15dd   :  { %v2637_v62 = vmul.f32 %v4167_v31, %v2635_v59  ;;  %v2808_v2 = vrot.slane %v4775_v58, 6  ;;  %v558_v31 = vcombine.high %v557_v5, %v557_v5  ;;  %v1968_v33 = vrot.slane %v1957_v4, %v4795_v25  ;;  %v2982_v5 = vld [vmem:[%s4971_s5 + $0x8] sm:$0xff] }
0x15de   :  { %v1964_v40 = vrot.slane %v1950_v11, %v4785_v14  ;;  %v2948_v35 = vrot.slane %v4775_v58, 7 }
0x15df   :  { %2731 = vrot.lane.b32.xlu1 %v2637_v62, %s4271_s22  ;;  %v2809_v47 = vsel %vm365_vm2, %v2808_v2, %v2807_v56  ;;  %v2645_v17 = vrot.slane %v2637_v62, %v4785_v14  ;;  %v572_v42 = vrot.slane %v558_v31, %v4785_v14  ;;  %v2297_v2 = vrot.slane %v4718_v52, %v4785_v14 }
0x15e0   :  { %2810 = vrot.lane.b32.xlu0 %v2809_v47, %s4271_s22  ;;  %v1972_v48 = vrot.slane %v1964_v40, %v4795_v25 }
0x15e1   :  { %v2653_v20 = vrot.slane %v2645_v17, %v4785_v14  ;;  %v580_v27 = vrot.slane %v572_v42, %v4795_v25  ;;  %v2646_v30 = vcombine.high %v2645_v17, %v2645_v17 }
0x15e3   :  { %v2664_v37 = vrot.slane %v2653_v20, %v4795_v25  ;;  %v2660_v46 = vrot.slane %v2646_v30, %v4785_v14 }
0x15e5   :  { %v2668_v34 = vrot.slane %v2660_v46, %v4795_v25 }
0x1651   :  { %v2732_v50 = vpop.permute.xlu1 %2731 }
0x1652   :  { %3773 = vmatmul.mubr.msk.f32.vlgmr.msra.gmra.mrb[22].mxu1 %vm66_vm1, %v2732_v50  ;;  %v2811_v9 = vpop.permute.xlu0 %2810  ;;  %v906_v50 = vcombine.high %v905_v55, %v905_v55 }
0x1653   :  { %3784 = vmatmul.mubr.msk.f32.vlgmr.msra.gmra.mrb[24].mxu0 %vm66_vm1, %v2811_v9 }
0x1725   :  { %v2801_v15 = vpop.f32.mrb[22].mxu1 }
0x1726   :  { %v3774_v8 = vpop.f32.mrb[23].mxu1  ;;  %v2880_v61 = vpop.f32.mrb[24].mxu0 }
0x1727   :  { %v2881_v10 = vadd.f32 %v2880_v61, %v2801_v15  ;;  %v3785_v54 = vpop.f32.mrb[25].mxu0 }
0x1729   :  { %v2884_v57 = vadd.f32 %v4747_v16, %v2881_v10  ;;  %v920_v10 = vrot.slane %v906_v50, %v4785_v14 }
0x172b   :  { %4176 = vtanh.f32 %v2884_v57  ;;  %v3359_v12 = vmul.f32 -1.442695, %v2884_v57  ;;  %v2298_v57 = vcombine.high %v2297_v2, %v2297_v2 }
0x172d   :  { %4178 = vpow2.f32 %v3359_v12  ;;  %v928_v12 = vrot.slane %v920_v10, %v4795_v25 }
0x1735   :  { %v4177_v3 = vpop.eup %4176 }
0x1736   :  { %2894 = vrot.lane.b32.xlu1 %v4177_v3, %s4272_s0 }
0x1737   :  { %v4179_v0 = vpop.eup %4178 }
0x1738   :  { %v2888_v18 = vadd.f32 1.0, %v4179_v0  ;;  %v2312_v0 = vrot.slane %v2298_v57, %v4785_v14 }
0x173a   :  { %4180 = vrcp.f32 %v2888_v18  ;;  %v2320_v18 = vrot.slane %v2312_v0, %v4795_v25 }
0x1744   :  { %v4789_v16 = vpop.eup %4180 }
0x1745   :  { %v2892_v45 = vmul.f32 %v4789_v16, %v4765_v51  ;;  %v1601_v51 = vrot.slane %v4616_v32, %v4785_v14  ;;  %v2305_v32 = vrot.slane %v2297_v2, %v4785_v14  ;;  %v3363_v2 = vld [vmem:[%s4971_s5 + $0x41] ss:$0 sm:$0xff] }
0x1747   :  { %v1609_v62 = vrot.slane %v1601_v51, %v4785_v14  ;;  %v1602_v8 = vcombine.high %v1601_v51, %v1601_v51  ;;  %v2316_v52 = vrot.slane %v2305_v32, %v4795_v25 }
0x1749   :  { %v1620_v15 = vrot.slane %v1609_v62, %v4795_v25  ;;  %v1616_v54 = vrot.slane %v1602_v8, %v4785_v14 }
0x174b   :  { %v1624_v60 = vrot.slane %v1616_v54, %v4795_v25 }
0x17a8   :  { %v2895_v6 = vpop.permute.xlu1 %2894 }
0x17a9   :  { %v2897_v22 = vmul.f32 %v4789_v16, %v2895_v6  ;;  %v3963_v6 = vpack.c.bf16 %v2982_v5, %v2981_v26 }
0x17ab   :  { %2899 = vrot.lane.b32.xlu0 %v2897_v22, %s4271_s22  ;;  %3964 = vmatprep.subr.bf16.mxu1 %v3963_v6  ;;  %v2983_v22 = vld [vmem:[%s4971_s5 + $0x10] sm:$0xff] }
0x17ac   :  { %3966 = vmatpush3.bf16.msra.mxu1 %v3963_v6 }
0x17af   :  { %581 = vrot.lane.b32.xlu0 %v576_v7, %s4271_s22  ;;  %v3967_v7 = vpack.c.bf16 %v2984_v28, %v2983_v22 }
0x17b1   :  { %3968 = vmatprep.subr.bf16.mxu1 %v3967_v7 }
0x17b2   :  { %3970 = vmatpush3.bf16.msra.mxu1 %v3967_v7 }
0x17b3   :  { %1277 = vrot.lane.b32.xlu0 %v1272_v24, %s4271_s22 }
0x17b7   :  { %1973 = vrot.lane.b32.xlu0 %v1968_v33, %s4271_s22 }
0x17bb   :  { %2669 = vrot.lane.b32.xlu0 %v2664_v37, %s4271_s22 }
0x17bf   :  { %583 = vrot.lane.b32.xlu0 %v580_v27, %s4271_s22 }
0x17c3   :  { %1279 = vrot.lane.b32.xlu0 %v1276_v44, %s4271_s22 }
0x17c7   :  { %1975 = vrot.lane.b32.xlu0 %v1972_v48, %s4271_s22  ;;  %v2985_v48 = vld [vmem:[%s4971_s5 + $0x20] sm:$0xff] }
0x17cb   :  { %2671 = vrot.lane.b32.xlu0 %v2668_v34, %s4271_s22  ;;  %v2986_v34 = vld [vmem:[%s4971_s5 + $0x28] sm:$0xff] }
0x17cf   :  { %2949 = vrot.lane.b32.xlu0 %v4772_v53, %s4271_s22 }
0x17d3   :  { %2961 = vrot.lane.b32.xlu0 %v4759_v43, %s4274_s4  ;;  %v913_v43 = vrot.slane %v905_v55, %v4785_v14 }
0x17d5   :  { %v924_v47 = vrot.slane %v913_v43, %v4795_v25 }
0x181d   :  { %v2900_v49 = vpop.permute.xlu0 %2899 }
0x181e   :  { %v4830_v39 = vadd.f32 %v2900_v49, %v2892_v45  ;;  %v3971_v45 = vpack.c.bf16 %v2986_v34, %v2985_v48  ;;  %v3360_v49 = vld [vmem:[%s4971_s5 + $0x40] ss:$0 sm:$0xff] }
0x1820   :  { %4182 = vtanh.f32 %v4830_v39  ;;  %3972 = vmatprep.subr.bf16.mxu0 %v3971_v45 }
0x1821   :  { %v582_v41 = vpop.permute.xlu0 %581  ;;  %3974 = vmatpush3.bf16.msra.mxu0 %v3971_v45 }
0x1822   :  { %588 = vst.msk [vmem:[#allocation2] sm:$0x1] %vm587_vm3, %v582_v41 }
0x1825   :  { %v1278_v53 = vpop.permute.xlu0 %1277 }
0x1826   :  { %1283 = vst.msk [vmem:[#allocation2 + $0x2] sm:$0x1] %vm587_vm3, %v1278_v53 }
0x1829   :  { %v1974_v56 = vpop.permute.xlu0 %1973 }
0x182a   :  { %v4183_v59 = vpop.eup %4182  ;;  %1979 = vst.msk [vmem:[#allocation2 + $0x4] sm:$0x1] %vm587_vm3, %v1974_v56  ;;  %v2987_v56 = vld [vmem:[%s4971_s5 + $0x30] sm:$0xff] }
0x182b   :  { %2905 = vrot.lane.b32.xlu1 %v4183_v59, %s4272_s0  ;;  %v2988_v59 = vld [vmem:[%s4971_s5 + $0x38] sm:$0xff] }
0x182c   :  { %v3975_v62 = vpack.c.bf16 %v2988_v59, %v2987_v56 }
0x182d   :  { %v2670_v13 = vpop.permute.xlu0 %2669 }
0x182e   :  { %2675 = vst.msk [vmem:[#allocation2 + $0x6] sm:$0x1] %vm587_vm3, %v2670_v13  ;;  %3976 = vmatprep.subr.bf16.mxu1 %v3975_v62 }
0x182f   :  { %929 = vrot.lane.b32.xlu1 %v924_v47, %s4271_s22 }
0x1831   :  { %v584_v9 = vpop.permute.xlu0 %583 }
0x1832   :  { %589 = vst.msk [vmem:[#allocation2 + $0x8] sm:$0x1] %vm587_vm3, %v584_v9 }
0x1833   :  { %1625 = vrot.lane.b32.xlu1 %v1620_v15, %s4271_s22 }
0x1835   :  { %v1280_v61 = vpop.permute.xlu0 %1279 }
0x1836   :  { %1284 = vst.msk [vmem:[#allocation2 + $0xa] sm:$0x1] %vm587_vm3, %v1280_v61 }
0x1837   :  { %2321 = vrot.lane.b32.xlu1 %v2316_v52, %s4271_s22 }
0x1839   :  { %v1976_v3 = vpop.permute.xlu0 %1975 }
0x183a   :  { %1980 = vst.msk [vmem:[#allocation2 + $0xc] sm:$0x1] %vm587_vm3, %v1976_v3 }
0x183b   :  { %931 = vrot.lane.b32.xlu1 %v928_v12, %s4271_s22 }
0x183d   :  { %v2672_v1 = vpop.permute.xlu0 %2671 }
0x183e   :  { %2676 = vst.msk [vmem:[#allocation2 + $0xe] sm:$0x1] %vm587_vm3, %v2672_v1 }
0x183f   :  { %1627 = vrot.lane.b32.xlu1 %v1624_v60, %s4271_s22 }
0x1841   :  { %v2950_v63 = vpop.permute.xlu0 %2949 }
0x1842   :  { %2956 = vst.msk [vmem:[#allocation6 - $0x7] sm:$0x80] %vm2955_vm4, %v2950_v63 }
0x1843   :  { %2323 = vrot.lane.b32.xlu1 %v2320_v18, %s4271_s22 }
0x1845   :  { %v2962_v19 = vpop.permute.xlu0 %2961 }
0x1846   :  { %2967 = vst.msk [vmem:[#allocation7 - $0x7] sm:$0x80] %vm2955_vm4, %v2962_v19 }
0x189d   :  { %v2906_v23 = vpop.permute.xlu1 %2905 }
0x189e   :  { %v2908_v21 = vmul.f32 %v4789_v16, %v2906_v23 }
0x18a0   :  { %v2916_v29 = vrot.slane %v2908_v21, %v4785_v14  ;;  %2969 = vrot.lane.b32.xlu0 %v2908_v21, %s4271_s22 }
0x18a1   :  { %v930_v4 = vpop.permute.xlu1 %929 }
0x18a2   :  { %v2917_v17 = vcombine.high %v2916_v29, %v2916_v29  ;;  %v2924_v24 = vrot.slane %v2916_v29, %v4785_v14  ;;  %935 = vst.msk [vmem:[#allocation2 + $0x1] sm:$0x1] %vm587_vm3, %v930_v4 }
0x18a4   :  { %v2931_v16 = vrot.slane %v2917_v17, %v4785_v14  ;;  %v2935_v31 = vrot.slane %v2924_v24, %v4795_v25  ;;  %v2960_v14 = vrot.slane %v4763_v36, 7 }
0x18a5   :  { %v1626_v20 = vpop.permute.xlu1 %1625 }
0x18a6   :  { %1631 = vst.msk [vmem:[#allocation2 + $0x3] sm:$0x1] %vm587_vm3, %v1626_v20  ;;  %2940 = vrot.lane.b32.xlu1 %v2935_v31, %s4271_s22  ;;  %v2939_v33 = vrot.slane %v2931_v16, %v4795_v25 }
0x18a9   :  { %v2322_v42 = vpop.permute.xlu1 %2321 }
0x18aa   :  { %2327 = vst.msk [vmem:[#allocation2 + $0x5] sm:$0x1] %vm587_vm3, %v2322_v42  ;;  %2942 = vrot.lane.b32.xlu1 %v2939_v33, %s4271_s22 }
0x18ad   :  { %v932_v37 = vpop.permute.xlu1 %931 }
0x18ae   :  { %936 = vst.msk [vmem:[#allocation2 + $0x9] sm:$0x1] %vm587_vm3, %v932_v37  ;;  %2951 = vrot.lane.b32.xlu1 %v2948_v35, %s4271_s22 }
0x18b1   :  { %v1628_v38 = vpop.permute.xlu1 %1627 }
0x18b2   :  { %1632 = vst.msk [vmem:[#allocation2 + $0xb] sm:$0x1] %vm587_vm3, %v1628_v38  ;;  %2963 = vrot.lane.b32.xlu1 %v2960_v14, %s4274_s4 }
0x18b5   :  { %v2324_v25 = vpop.permute.xlu1 %2323 }
0x18b6   :  { %2328 = vst.msk [vmem:[#allocation2 + $0xd] sm:$0x1] %vm587_vm3, %v2324_v25  ;;  %2976 = vrot.lane.b32.xlu1 %v4830_v39, %s4274_s4 }
0x1912   :  { %v2970_v58 = vpop.permute.xlu0 %2969 }
0x1913   :  { %2974 = vst.msk [vmem:[#allocation6 + $0x2] sm:$0x3] %vm2973_vm5, %v2970_v58 }
0x1918   :  { %v2941_v11 = vpop.permute.xlu1 %2940 }
0x1919   :  { %2946 = vst.msk [vmem:[#allocation2 + $0x7] sm:$0x1] %vm587_vm3, %v2941_v11 }
0x191c   :  { %v2943_v27 = vpop.permute.xlu1 %2942 }
0x191d   :  { %2947 = vst.msk [vmem:[#allocation2 + $0xf] sm:$0x1] %vm587_vm3, %v2943_v27 }
0x1920   :  { %v2952_v36 = vpop.permute.xlu1 %2951  ;;  %v2992_v40 = vld [vmem:[#allocation2] sm:$0xff] }
0x1921   :  { %2957 = vst.msk [vmem:[#allocation6 + $0x1] sm:$0x1] %vm587_vm3, %v2952_v36  ;;  %3794 = vmatprep.mubr.msk.f32.mxu1 %vm66_vm1, %v2992_v40 }
0x1924   :  { %v2964_v30 = vpop.permute.xlu1 %2963  ;;  %v2993_v44 = vld [vmem:[#allocation2 + $0x8] sm:$0xff] }
0x1925   :  { %2968 = vst.msk [vmem:[#allocation7 + $0x1] sm:$0x1] %vm587_vm3, %v2964_v30  ;;  %3795 = vmatmul.mubr.msk.f32.vlgmr.msra.gmra.mrb[24].mxu1 %vm66_vm1, %v2993_v44 }
0x1926   :  { %3978 = vmatpush3.bf16.msra.mxu1 %v3975_v62 }
0x1928   :  { %v2977_v46 = vpop.permute.xlu1 %2976 }
0x1929   :  { %2980 = vst.msk [vmem:[#allocation7 + $0x2] sm:$0x3] %vm2973_vm5, %v2977_v46 }
0x19f8   :  { %v3796_v39 = vpop.f32.mrb[24].mxu1 }
0x19f9   :  { %v3076_v41 = vadd.f32 %v3796_v39, %v3360_v49  ;;  %v3070_v55 = vpop.f32.mrb[25].mxu1 }
0x19fa   :  { %v3071_v53 = vadd.f32 %v3360_v49, %v3070_v55 }
0x19fb   :  { %v3080_v51 = vmax.f32 %v3076_v41, 0.0 }
0x19fc   :  { %v3079_v43 = vmax.f32 %v3071_v53, 0.0 }
0x19fe   :  { %3801 = vmatprep.mubr.msk.f32.mxu0 %vm3085_vm6, %v3079_v43 }
0x19ff   :  { %3802 = vmatmul.mubr.msk.f32.vlgmr.msra.gmra.mrb[26].mxu0 %vm3085_vm6, %v3080_v51 }
0x1ad2   :  { %v3803_v13 = vpop.f32.mrb[26].mxu0 }
0x1ad3   :  { %v3164_v47 = vadd.f32 %v3803_v13, %v3363_v2  ;;  %v3158_v50 = vpop.f32.mrb[27].mxu0 }
0x1ad4   :  { %v3159_v32 = vadd.f32 %v3363_v2, %v3158_v50 }
0x1ad5   :  { %v3168_v15 = vmax.f32 %v3164_v47, 0.0 }
0x1ad6   :  { %v3167_v9 = vmax.f32 %v3159_v32, 0.0 }
0x1ad8   :  { %3808 = vmatprep.mubr.msk.f32.mxu1 %vm3085_vm6, %v3167_v9 }
0x1ad9   :  { %3809 = vmatmul.mubr.msk.f32.vlgmr.msra.gmra.mrb[26].mxu1 %vm3085_vm6, %v3168_v15 }
0x1ada   :  { %4226 = shalt.err (!%p4223_p12)
}
0x1adb   :  { %s4227_s14 = scalar_lea.hbm %s4973_s7, 64 }
0x1adc   :  { %p4228_p13 = scmp.ne.s32.totalorder %s4973_s7, %s4227_s14  ;;  %p4231_p0 = scmp.lt.u32.totalorder %s4227_s14, %s4973_s7 }
0x1ade   :  { %p4233_p1 = pnand %p4231_p0, %p4228_p13 }
0x1ae0   :  { %4236 = shalt.err (!%p4233_p1)
}
0x1ae1   :  { %s4277_s3 = smov 2   ;;  %s4237_s21 = scalar_lea.vmem %s3289_s2, 64 }
0x1ae2   :  { %3282 = dma.vmem_to_hbm [thread:$0]  %s3277_s10, 64, %s4973_s7, [#allocation5], %s4271_s22, %s4271_s22, %s4277_s3  }
0x1ae3   :  { %p4238_p2 = scmp.ne.s32.totalorder %s3289_s2, %s4237_s21  ;;  %p4242_p3 = scmp.lt.s32.totalorder %s3289_s2, %s3289_s2 }
0x1ae4   :  { %p4243_p4 = scmp.lt.s32.totalorder %s4237_s21, %s4237_s21 }
0x1ae6   :  { %p4244_p5 = por %p4243_p4, %p4242_p3 }
0x1ae8   :  { %p4245_p6 = pnand %p4244_p5, %p4238_p2 }
0x1aea   :  { %4248 = shalt.err (!%p4245_p6)
}
0x1aeb   :  { %s4249_s25 = scalar_lea.hbm %s4974_s8, 64 }
0x1aec   :  { %p4250_p7 = scmp.ne.s32.totalorder %s4974_s8, %s4249_s25  ;;  %p4253_p8 = scmp.lt.u32.totalorder %s4249_s25, %s4974_s8 }
0x1aee   :  { %p4255_p9 = pnand %p4253_p8, %p4250_p7 }
0x1af0   :  { %4258 = shalt.err (!%p4255_p9)
}
0x1af1   :  { %3294 = dma.vmem_to_hbm [thread:$0]  %s3289_s2, 64, %s4974_s8, [#allocation8], %s4271_s22, %s4271_s22, %s4277_s3   ;;  %vm3266_vm7 = vcmask 7168  }
0x1af2   :  { %v3366_v8 = vld [vmem:[%s4971_s5 + $0x42] ss:$0 sm:$0xff] }
0x1bac   :  { %v3810_v61 = vpop.f32.mrb[26].mxu1 }
0x1bad   :  { %v3251_v52 = vadd.f32 %v3810_v61, %v3366_v8  ;;  %v3245_v10 = vpop.f32.mrb[27].mxu1 }
0x1bae   :  { %v3246_v54 = vadd.f32 %v3366_v8, %v3245_v10 }
0x1baf   :  { %v3370_v57 = vmul.f32 -1.442695, %v3251_v52 }
0x1bb0   :  { %v3369_v3 = vmul.f32 -1.442695, %v3246_v54 }
0x1bb1   :  { %4184 = vpow2.f32 %v3370_v57 }
0x1bb2   :  { %4186 = vpow2.f32 %v3369_v3 }
0x1bbb   :  { %v4185_v12 = vpop.eup %4184 }
0x1bbc   :  { %v4187_v0 = vpop.eup %4186  ;;  %v3261_v1 = vadd.f32 1.0, %v4185_v12 }
0x1bbd   :  { %v3260_v60 = vadd.f32 1.0, %v4187_v0 }
0x1bbe   :  { %4188 = vrcp.f32 %v3261_v1 }
0x1bbf   :  { %4190 = vrcp.f32 %v3260_v60 }
0x1bc8   :  { %v4189_v63 = vpop.eup %4188 }
0x1bc9   :  { %v4191_v18 = vpop.eup %4190  ;;  %3268 = vst.msk [vmem:[%s4972_s6 + $0x8] sm:$0xff] %vm3266_vm7, %v4189_v63 }
0x1bca   :  { %3267 = vst.msk [vmem:[%s4972_s6] sm:$0xff] %vm3266_vm7, %v4191_v18 }
0x1bcb   :  { %4261 = dma.done.wait [#allocation5], 64  }
0x1bcc   :  { %4262 = vsyncadd [#allocation5], 4294967232 }
0x1bcd   :  { %4263 = dma.done.wait [#allocation8], 64  }
0x1bce   :  { %4264 = vsyncadd [#allocation8], 4294967232 }
0x1bcf   :  { %3303 = vsyncpa [#allocation4], 1 }
0x1bd0   :  { %3304 = vsyncpa [#allocation5], 1 }
0x1bd1   :  { %3305 = vsyncpa [#allocation8], 1 }

</bundles_post_ra>
